<compile_context>
chip_gen: v7x
topology: tpu7x:2x2x1
jax: 0.10.0
libtpu: 0.0.40
codegen_flags: <defaults>
</compile_context>

<pallas_src>
import functools

import jax
import jax.numpy as jnp
from jax.experimental import pallas as pl
from jax.experimental.pallas import tpu as pltpu


# ----------------------------------------------------------------------------
# Fused GEMM Pallas kernels
#   y = [relu]( [relu](x) @ W + b [+ residual] )
# x, W in bf16; accumulate + epilogue in f32.
# ----------------------------------------------------------------------------

def _gemm_kernel(x_ref, w_ref, b_ref, o_ref, *, in_relu, out_relu):
    x = x_ref[...]
    if in_relu:
        x = jnp.maximum(x, jnp.zeros_like(x))
    acc = jnp.dot(x, w_ref[...], preferred_element_type=jnp.float32)
    acc = acc + b_ref[...]
    if out_relu:
        acc = jnp.maximum(acc, 0.0)
    o_ref[...] = acc


def _gemm_res_kernel(x_ref, w_ref, b_ref, r_ref, o_ref, *, in_relu, out_relu):
    x = x_ref[...]
    if in_relu:
        x = jnp.maximum(x, jnp.zeros_like(x))
    acc = jnp.dot(x, w_ref[...], preferred_element_type=jnp.float32)
    acc = acc + b_ref[...] + r_ref[...]          # fused skip-add (f32)
    if out_relu:
        acc = jnp.maximum(acc, 0.0)
    o_ref[...] = acc


def _round_up(n, m):
    return ((n + m - 1) // m) * m


def _pad2d(a, rows, cols):
    r, c = a.shape
    if r == rows and c == cols:
        return a
    return jnp.pad(a, ((0, rows - r), (0, cols - c)))


def fused_gemm(x, w, b, residual=None, in_relu=False, out_relu=False, tm=128):
    """y = act( act(x) @ w + b [+ residual] ).

    x:(M,K)  w:(K,N)  b:(N,)  residual:(M,N) or None  -> (M,N) float32.
    M is padded to a multiple of tm; K and N are zero-padded to multiples of
    128 so both MXU passes and output stores are fully lane-dense.
    """
    M, K = x.shape
    K2, N = w.shape
    assert K == K2, (K, K2)

    Mp = _round_up(max(M, 1), tm)
    Kp = _round_up(K, 128)
    Np = _round_up(N, 128)

    xp = _pad2d(x.astype(jnp.bfloat16), Mp, Kp)
    wp = _pad2d(w.astype(jnp.bfloat16), Kp, Np)
    bp = _pad2d(b.reshape(1, N).astype(jnp.float32), 1, Np)

    in_specs = [
        pl.BlockSpec((tm, Kp), lambda i: (i, 0)),
        pl.BlockSpec((Kp, Np), lambda i: (0, 0)),   # weight stays VMEM-resident
        pl.BlockSpec((1, Np), lambda i: (0, 0)),
    ]
    args = [xp, wp, bp]

    if residual is None:
        kernel = functools.partial(_gemm_kernel, in_relu=in_relu, out_relu=out_relu)
    else:
        rp = _pad2d(residual.astype(jnp.float32), Mp, Np)
        in_specs.append(pl.BlockSpec((tm, Np), lambda i: (i, 0)))
        args.append(rp)
        kernel = functools.partial(_gemm_res_kernel, in_relu=in_relu, out_relu=out_relu)

    out = pl.pallas_call(
        kernel,
        out_shape=jax.ShapeDtypeStruct((Mp, Np), jnp.float32),
        grid_spec=pltpu.PrefetchScalarGridSpec(
            num_scalar_prefetch=0,
            grid=(Mp // tm,),
            in_specs=in_specs,
            out_specs=pl.BlockSpec((tm, Np), lambda i: (i, 0)),
        ),
        compiler_params=pltpu.CompilerParams(
            dimension_semantics=("parallel",),
            vmem_limit_bytes=32 * 1024 * 1024,
        ),
    )(*args)

    if Mp != M or Np != N:
        out = out[:M, :N]
    return out


# ----------------------------------------------------------------------------
# Conv = im2col (glue, bf16) + fused Pallas GEMM
# ----------------------------------------------------------------------------

def im2col(x, k, s, p):
    """x: NHWC -> (B*Ho*Wo, k*k*C) with (kh, kw, Cin) ordering."""
    B, H, W, C = x.shape
    xp = jnp.pad(x, ((0, 0), (p, p), (p, p), (0, 0)))
    Ho = (H + 2 * p - k) // s + 1
    Wo = (W + 2 * p - k) // s + 1
    cols = []
    for i in range(k):
        for j in range(k):
            cols.append(xp[:, i:i + (Ho - 1) * s + 1:s,
                           j:j + (Wo - 1) * s + 1:s, :])
    cols = jnp.concatenate(cols, axis=-1)
    return cols.reshape(B * Ho * Wo, k * k * C), (B, Ho, Wo)


def _w_to_mat(w):
    """torch conv weight (Cout, Cin, kh, kw) -> (kh*kw*Cin, Cout) GEMM matrix."""
    Cout, Cin, kh, kw = w.shape
    return jnp.transpose(w, (2, 3, 1, 0)).reshape(kh * kw * Cin, Cout)


def conv2d(x, w, b, stride, padding, in_relu=False, out_relu=False):
    """x: NHWC; w: torch layout (Cout, Cin, kh, kw); b: (Cout,)."""
    Cout, Cin, kh, kw = w.shape
    assert kh == kw
    # Cast before im2col so the materialized column matrix lives in bf16.
    cols, (B, Ho, Wo) = im2col(x.astype(jnp.bfloat16), kh, stride, padding)
    y = fused_gemm(cols, _w_to_mat(w), b, in_relu=in_relu, out_relu=out_relu)
    return y.reshape(B, Ho, Wo, Cout)


# ----------------------------------------------------------------------------
# VQ-VAE style Encoder + CCVAE forward
# ----------------------------------------------------------------------------

def encoder_forward(x, p):
    """Standard VQ-VAE Encoder. x: NHWC -> NHWC (num_hiddens, /4 spatial).

    Returns the pre-ReLU residual-stack output; the stack's final ReLU is
    fused into the downstream 1x1-conv GEMM (in_relu=True).
    """
    x = conv2d(x, p['conv1_w'], p['conv1_b'], stride=2, padding=1, out_relu=True)
    x = conv2d(x, p['conv2_w'], p['conv2_b'], stride=2, padding=1, out_relu=True)
    x = conv2d(x, p['conv3_w'], p['conv3_b'], stride=1, padding=1)
    B, H, W, C = x.shape
    M = B * H * W
    for (w3, b3, w1, b1) in p['res']:
        # h = relu( conv3x3( relu(x) ) )
        #   leading ReLU fused on im2col columns (commutes with zero padding).
        cols, _ = im2col(x.astype(jnp.bfloat16), 3, 1, 1)
        h = fused_gemm(cols, _w_to_mat(w3), b3, in_relu=True, out_relu=True)
        # x = x + conv1x1(h)   -- skip-add fused in the GEMM epilogue.
        x = fused_gemm(h, _w_to_mat(w1), b1,
                       residual=x.reshape(M, C)).reshape(B, H, W, C)
    return x


def ccvae_forward(obs_nchw, params, input_channels, imsize):
    """obs_nchw: (B, 2*C, imsize, imsize) -> (B, representation_size)."""
    B = obs_nchw.shape[0]
    obs = obs_nchw.reshape(B, 2 * input_channels, imsize, imsize)
    x_cond = obs[:, input_channels:]

    obs_nhwc = jnp.transpose(obs, (0, 2, 3, 1))
    cond_nhwc = jnp.transpose(x_cond, (0, 2, 3, 1))

    conv = encoder_forward(obs_nhwc, params['encoder'])
    cond_conv = encoder_forward(cond_nhwc, params['cond_encoder'])

    Bc, H, W, C = conv.shape
    M = Bc * H * W
    ed = params['f_mu_w'].shape[0]

    # Merge the two trailing 1x1 convs into one GEMM:
    #   activations stacked along M, weights stacked along N (padded to 128).
    # The encoders' final residual-stack ReLU is fused here via in_relu=True.
    x_stack = jnp.concatenate([conv.reshape(M, C), cond_conv.reshape(M, C)], axis=0)
    w_stack = jnp.concatenate([_w_to_mat(params['f_mu_w']),
                               _w_to_mat(params['conv_cond_w'])], axis=1)   # (C, 2*ed)
    b_stack = jnp.concatenate([params['f_mu_b'], params['conv_cond_b']])
    y = fused_gemm(x_stack, w_stack, b_stack, in_relu=True)                 # (2M, 2*ed)

    mu = y[:M, :ed].reshape(Bc, H, W, ed)
    z_cond = y[M:, ed:2 * ed].reshape(Bc, H, W, ed)

    # Flatten exactly like torch .reshape on NCHW tensors.
    mu_flat = jnp.transpose(mu, (0, 3, 1, 2)).reshape(B, -1)
    z_cond_flat = jnp.transpose(z_cond, (0, 3, 1, 2)).reshape(B, -1)
    return jnp.concatenate([mu_flat, z_cond_flat], axis=1)


# ----------------------------------------------------------------------------
# Deterministic parameter construction
# ----------------------------------------------------------------------------

def _w(key, shape, fan_in):
    return jax.random.normal(key, shape, jnp.float32) / jnp.sqrt(fan_in)


def init_encoder_params(key, in_channels, nh, nrl, nrh):
    keys = jax.random.split(key, 6 + 4 * nrl)
    p = {}
    p['conv1_w'] = _w(keys[0], (nh // 2, in_channels, 4, 4), in_channels * 16)
    p['conv1_b'] = 0.01 * jax.random.normal(keys[1], (nh // 2,), jnp.float32)
    p['conv2_w'] = _w(keys[2], (nh, nh // 2, 4, 4), (nh // 2) * 16)
    p['conv2_b'] = 0.01 * jax.random.normal(keys[3], (nh,), jnp.float32)
    p['conv3_w'] = _w(keys[4], (nh, nh, 3, 3), nh * 9)
    p['conv3_b'] = 0.01 * jax.random.normal(keys[5], (nh,), jnp.float32)
    res = []
    for l in range(nrl):
        k0 = keys[6 + 4 * l]
        k1 = keys[6 + 4 * l + 1]
        w3 = _w(k0, (nrh, nh, 3, 3), nh * 9)
        b3 = jnp.zeros((nrh,), jnp.float32)   # VQ-VAE residual convs use bias=False
        w1 = _w(k1, (nh, nrh, 1, 1), nrh)
        b1 = jnp.zeros((nh,), jnp.float32)
        res.append((w3, b3, w1, b1))
    p['res'] = res
    return p


def init_ccvae_params(key, input_channels, num_hiddens, num_residual_layers,
                      num_residual_hiddens, embedding_dim):
    k_enc, k_cenc, k1, k2, k3, k4, k5, k6 = jax.random.split(key, 8)
    params = {
        'encoder': init_encoder_params(k_enc, 2 * input_channels, num_hiddens,
                                       num_residual_layers, num_residual_hiddens),
        'cond_encoder': init_encoder_params(k_cenc, input_channels, num_hiddens,
                                            num_residual_layers, num_residual_hiddens),
        'f_mu_w': _w(k1, (embedding_dim, num_hiddens, 1, 1), num_hiddens),
        'f_mu_b': 0.01 * jax.random.normal(k2, (embedding_dim,), jnp.float32),
        'f_logvar_w': _w(k3, (embedding_dim, num_hiddens, 1, 1), num_hiddens),
        'f_logvar_b': 0.01 * jax.random.normal(k4, (embedding_dim,), jnp.float32),
        'conv_cond_w': _w(k5, (embedding_dim, num_hiddens, 1, 1), num_hiddens),
        'conv_cond_b': 0.01 * jax.random.normal(k6, (embedding_dim,), jnp.float32),
    }
    return params


# ----------------------------------------------------------------------------
# Main
# ----------------------------------------------------------------------------

if __name__ == "__main__":
    # Small but valid configuration (imsize must be one of {32,36,48,64,84,100}).
    batch = 2
    input_channels = 3
    imsize = 32                 # -> root_len = 8
    embedding_dim = 1
    num_hiddens = 32
    num_residual_layers = 2
    num_residual_hiddens = 16

    root_len = 8
    latent_size = root_len * root_len * embedding_dim        # 64
    representation_size = 2 * latent_size                    # 128

    key = jax.random.PRNGKey(0)
    k_params, k_obs = jax.random.split(key)
    params = init_ccvae_params(k_params, input_channels, num_hiddens,
                               num_residual_layers, num_residual_hiddens,
                               embedding_dim)

    # obs: (B, 2*C, imsize, imsize)  -- PyTorch NCHW convention.
    obs = jax.random.uniform(k_obs, (batch, 2 * input_channels, imsize, imsize),
                             dtype=jnp.float32)

    fwd = jax.jit(functools.partial(ccvae_forward,
                                    input_channels=input_channels,
                                    imsize=imsize))
    z_cat = fwd(obs, params)
    z_cat = jax.block_until_ready(z_cat)

    assert z_cat.shape == (batch, representation_size), z_cat.shape
    assert z_cat.dtype == jnp.float32
    assert bool(jnp.all(jnp.isfinite(z_cat)))
    print("KERNEL_OK")
</pallas_src>

<mosaic_0001>
module attributes {stable_mosaic.version = 11 : i64} {
  func.func @_gemm_kernel(%arg0: i32, %arg1: memref<128x128xbf16, #tpu.memory_space<vmem>>, %arg2: memref<128x128xbf16, #tpu.memory_space<vmem>>, %arg3: memref<1x128xf32, #tpu.memory_space<vmem>>, %arg4: memref<128x128xf32, #tpu.memory_space<vmem>>) attributes {dimension_semantics = [#tpu.dimension_semantics<parallel>], iteration_bounds = array<i64: 4>, scalar_prefetch = 0 : i64, scratch_operands = 0 : i64, tpu.core_type = #tpu.core_type<tc>, window_params = [{transform_indices = @transform_0, window_bounds = array<i64: 128, 128>}, {pipeline_mode = #tpu.pipeline_mode<synchronous>, transform_indices = @transform_1, window_bounds = array<i64: 128, 128>}, {pipeline_mode = #tpu.pipeline_mode<synchronous>, transform_indices = @transform_2, window_bounds = array<i64: 1, 128>}, {transform_indices = @transform_3, window_bounds = array<i64: 128, 128>}]} {
    %c0 = arith.constant 0 : index
    %c0_0 = arith.constant 0 : index
    %0 = vector.load %arg1[%c0, %c0_0] : memref<128x128xbf16, #tpu.memory_space<vmem>>, vector<128x128xbf16>
    %c0_1 = arith.constant 0 : index
    %c0_2 = arith.constant 0 : index
    %1 = vector.load %arg2[%c0_1, %c0_2] : memref<128x128xbf16, #tpu.memory_space<vmem>>, vector<128x128xbf16>
    %cst = arith.constant dense<0.000000e+00> : vector<128x128xf32>
    %2 = tpu.matmul %0, %1, %cst {dimension_numbers = #tpu.dot_dimension_numbers<[1], [0], [0], [1], [0, 0, 1, 1], [], []>} : vector<128x128xbf16>, vector<128x128xbf16>, vector<128x128xf32> -> vector<128x128xf32>
    %c0_3 = arith.constant 0 : index
    %c0_4 = arith.constant 0 : index
    %3 = vector.load %arg3[%c0_3, %c0_4] : memref<1x128xf32, #tpu.memory_space<vmem>>, vector<1x128xf32>
    %4 = vector.broadcast %3 : vector<1x128xf32> to vector<128x128xf32>
    %5 = arith.addf %2, %4 : vector<128x128xf32>
    %cst_5 = arith.constant 0.000000e+00 : f32
    %6 = vector.broadcast %cst_5 : f32 to vector<128x128xf32>
    %7 = arith.maximumf %5, %6 : vector<128x128xf32>
    %c0_6 = arith.constant 0 : index
    %c0_7 = arith.constant 0 : index
    %8 = vector.load %arg4[%c0_6, %c0_7] : memref<128x128xf32, #tpu.memory_space<vmem>>, vector<128x128xf32>
    tpu.vector_store %arg4[%c0_6, %c0_7], %7 {strides = array<i32>} : memref<128x128xf32, #tpu.memory_space<vmem>>, vector<128x128xf32>,
    return
  }
  func.func @transform_0(%arg0: i32) -> (i32, i32) {
    %c0_i32 = arith.constant 0 : i32
    %c0_i32_0 = arith.constant 0 : i32
    return %arg0, %c0_i32 : i32, i32
  }
  func.func @transform_1(%arg0: i32) -> (i32, i32) {
    %c0_i32 = arith.constant 0 : i32
    %c0_i32_0 = arith.constant 0 : i32
    %c0_i32_1 = arith.constant 0 : i32
    return %c0_i32, %c0_i32_0 : i32, i32
  }
  func.func @transform_2(%arg0: i32) -> (i32, i32) {
    %c0_i32 = arith.constant 0 : i32
    %c0_i32_0 = arith.constant 0 : i32
    %c0_i32_1 = arith.constant 0 : i32
    return %c0_i32, %c0_i32_0 : i32, i32
  }
  func.func @transform_3(%arg0: i32) -> (i32, i32) {
    %c0_i32 = arith.constant 0 : i32
    %c0_i32_0 = arith.constant 0 : i32
    return %arg0, %c0_i32 : i32, i32
  }
}

module attributes {stable_mosaic.version = 11 : i64} {
  func.func @_gemm_kernel(%arg0: i32, %arg1: memref<128x256xbf16, #tpu.memory_space<vmem>>, %arg2: memref<256x128xbf16, #tpu.memory_space<vmem>>, %arg3: memref<1x128xf32, #tpu.memory_space<vmem>>, %arg4: memref<128x128xf32, #tpu.memory_space<vmem>>) attributes {dimension_semantics = [#tpu.dimension_semantics<parallel>], iteration_bounds = array<i64: 1>, scalar_prefetch = 0 : i64, scratch_operands = 0 : i64, tpu.core_type = #tpu.core_type<tc>, window_params = [{transform_indices = @transform_0, window_bounds = array<i64: 128, 256>}, {pipeline_mode = #tpu.pipeline_mode<synchronous>, transform_indices = @transform_1, window_bounds = array<i64: 256, 128>}, {pipeline_mode = #tpu.pipeline_mode<synchronous>, transform_indices = @transform_2, window_bounds = array<i64: 1, 128>}, {transform_indices = @transform_3, window_bounds = array<i64: 128, 128>}]} {
    %c0 = arith.constant 0 : index
    %c0_0 = arith.constant 0 : index
    %0 = vector.load %arg1[%c0, %c0_0] : memref<128x256xbf16, #tpu.memory_space<vmem>>, vector<128x256xbf16>
    %c0_1 = arith.constant 0 : index
    %c0_2 = arith.constant 0 : index
    %1 = vector.load %arg2[%c0_1, %c0_2] : memref<256x128xbf16, #tpu.memory_space<vmem>>, vector<256x128xbf16>
    %cst = arith.constant dense<0.000000e+00> : vector<128x128xf32>
    %2 = tpu.matmul %0, %1, %cst {dimension_numbers = #tpu.dot_dimension_numbers<[1], [0], [0], [1], [0, 0, 1, 1], [], []>} : vector<128x256xbf16>, vector<256x128xbf16>, vector<128x128xf32> -> vector<128x128xf32>
    %c0_3 = arith.constant 0 : index
    %c0_4 = arith.constant 0 : index
    %3 = vector.load %arg3[%c0_3, %c0_4] : memref<1x128xf32, #tpu.memory_space<vmem>>, vector<1x128xf32>
    %4 = vector.broadcast %3 : vector<1x128xf32> to vector<128x128xf32>
    %5 = arith.addf %2, %4 : vector<128x128xf32>
    %cst_5 = arith.constant 0.000000e+00 : f32
    %6 = vector.broadcast %cst_5 : f32 to vector<128x128xf32>
    %7 = arith.maximumf %5, %6 : vector<128x128xf32>
    %c0_6 = arith.constant 0 : index
    %c0_7 = arith.constant 0 : index
    %8 = vector.load %arg4[%c0_6, %c0_7] : memref<128x128xf32, #tpu.memory_space<vmem>>, vector<128x128xf32>
    tpu.vector_store %arg4[%c0_6, %c0_7], %7 {strides = array<i32>} : memref<128x128xf32, #tpu.memory_space<vmem>>, vector<128x128xf32>,
    return
  }
  func.func @transform_0(%arg0: i32) -> (i32, i32) {
    %c0_i32 = arith.constant 0 : i32
    %c0_i32_0 = arith.constant 0 : i32
    return %arg0, %c0_i32 : i32, i32
  }
  func.func @transform_1(%arg0: i32) -> (i32, i32) {
    %c0_i32 = arith.constant 0 : i32
    %c0_i32_0 = arith.constant 0 : i32
    %c0_i32_1 = arith.constant 0 : i32
    return %c0_i32, %c0_i32_0 : i32, i32
  }
  func.func @transform_2(%arg0: i32) -> (i32, i32) {
    %c0_i32 = arith.constant 0 : i32
    %c0_i32_0 = arith.constant 0 : i32
    %c0_i32_1 = arith.constant 0 : i32
    return %c0_i32, %c0_i32_0 : i32, i32
  }
  func.func @transform_3(%arg0: i32) -> (i32, i32) {
    %c0_i32 = arith.constant 0 : i32
    %c0_i32_0 = arith.constant 0 : i32
    return %arg0, %c0_i32 : i32, i32
  }
}

module attributes {stable_mosaic.version = 11 : i64} {
  func.func @_gemm_kernel(%arg0: i32, %arg1: memref<128x384xbf16, #tpu.memory_space<vmem>>, %arg2: memref<384x128xbf16, #tpu.memory_space<vmem>>, %arg3: memref<1x128xf32, #tpu.memory_space<vmem>>, %arg4: memref<128x128xf32, #tpu.memory_space<vmem>>) attributes {dimension_semantics = [#tpu.dimension_semantics<parallel>], iteration_bounds = array<i64: 1>, scalar_prefetch = 0 : i64, scratch_operands = 0 : i64, tpu.core_type = #tpu.core_type<tc>, window_params = [{transform_indices = @transform_0, window_bounds = array<i64: 128, 384>}, {pipeline_mode = #tpu.pipeline_mode<synchronous>, transform_indices = @transform_1, window_bounds = array<i64: 384, 128>}, {pipeline_mode = #tpu.pipeline_mode<synchronous>, transform_indices = @transform_2, window_bounds = array<i64: 1, 128>}, {transform_indices = @transform_3, window_bounds = array<i64: 128, 128>}]} {
    %c0 = arith.constant 0 : index
    %c0_0 = arith.constant 0 : index
    %0 = vector.load %arg1[%c0, %c0_0] : memref<128x384xbf16, #tpu.memory_space<vmem>>, vector<128x384xbf16>
    %c0_1 = arith.constant 0 : index
    %c0_2 = arith.constant 0 : index
    %1 = vector.load %arg2[%c0_1, %c0_2] : memref<384x128xbf16, #tpu.memory_space<vmem>>, vector<384x128xbf16>
    %cst = arith.constant dense<0.000000e+00> : vector<128x128xf32>
    %2 = tpu.matmul %0, %1, %cst {dimension_numbers = #tpu.dot_dimension_numbers<[1], [0], [0], [1], [0, 0, 1, 1], [], []>} : vector<128x384xbf16>, vector<384x128xbf16>, vector<128x128xf32> -> vector<128x128xf32>
    %c0_3 = arith.constant 0 : index
    %c0_4 = arith.constant 0 : index
    %3 = vector.load %arg3[%c0_3, %c0_4] : memref<1x128xf32, #tpu.memory_space<vmem>>, vector<1x128xf32>
    %4 = vector.broadcast %3 : vector<1x128xf32> to vector<128x128xf32>
    %5 = arith.addf %2, %4 : vector<128x128xf32>
    %c0_5 = arith.constant 0 : index
    %c0_6 = arith.constant 0 : index
    %6 = vector.load %arg4[%c0_5, %c0_6] : memref<128x128xf32, #tpu.memory_space<vmem>>, vector<128x128xf32>
    tpu.vector_store %arg4[%c0_5, %c0_6], %5 {strides = array<i32>} : memref<128x128xf32, #tpu.memory_space<vmem>>, vector<128x128xf32>,
    return
  }
  func.func @transform_0(%arg0: i32) -> (i32, i32) {
    %c0_i32 = arith.constant 0 : i32
    %c0_i32_0 = arith.constant 0 : i32
    return %arg0, %c0_i32 : i32, i32
  }
  func.func @transform_1(%arg0: i32) -> (i32, i32) {
    %c0_i32 = arith.constant 0 : i32
    %c0_i32_0 = arith.constant 0 : i32
    %c0_i32_1 = arith.constant 0 : i32
    return %c0_i32, %c0_i32_0 : i32, i32
  }
  func.func @transform_2(%arg0: i32) -> (i32, i32) {
    %c0_i32 = arith.constant 0 : i32
    %c0_i32_0 = arith.constant 0 : i32
    %c0_i32_1 = arith.constant 0 : i32
    return %c0_i32, %c0_i32_0 : i32, i32
  }
  func.func @transform_3(%arg0: i32) -> (i32, i32) {
    %c0_i32 = arith.constant 0 : i32
    %c0_i32_0 = arith.constant 0 : i32
    return %arg0, %c0_i32 : i32, i32
  }
}

module attributes {stable_mosaic.version = 11 : i64} {
  func.func @_gemm_kernel(%arg0: i32, %arg1: memref<128x384xbf16, #tpu.memory_space<vmem>>, %arg2: memref<384x128xbf16, #tpu.memory_space<vmem>>, %arg3: memref<1x128xf32, #tpu.memory_space<vmem>>, %arg4: memref<128x128xf32, #tpu.memory_space<vmem>>) attributes {dimension_semantics = [#tpu.dimension_semantics<parallel>], iteration_bounds = array<i64: 1>, scalar_prefetch = 0 : i64, scratch_operands = 0 : i64, tpu.core_type = #tpu.core_type<tc>, window_params = [{transform_indices = @transform_0, window_bounds = array<i64: 128, 384>}, {pipeline_mode = #tpu.pipeline_mode<synchronous>, transform_indices = @transform_1, window_bounds = array<i64: 384, 128>}, {pipeline_mode = #tpu.pipeline_mode<synchronous>, transform_indices = @transform_2, window_bounds = array<i64: 1, 128>}, {transform_indices = @transform_3, window_bounds = array<i64: 128, 128>}]} {
    %c0 = arith.constant 0 : index
    %c0_0 = arith.constant 0 : index
    %0 = vector.load %arg1[%c0, %c0_0] : memref<128x384xbf16, #tpu.memory_space<vmem>>, vector<128x384xbf16>
    %cst = arith.constant 0.000000e+00 : bf16
    %1 = vector.broadcast %cst : bf16 to vector<128x384xbf16>
    %2 = arith.maximumf %0, %1 : vector<128x384xbf16>
    %c0_1 = arith.constant 0 : index
    %c0_2 = arith.constant 0 : index
    %3 = vector.load %arg2[%c0_1, %c0_2] : memref<384x128xbf16, #tpu.memory_space<vmem>>, vector<384x128xbf16>
    %cst_3 = arith.constant dense<0.000000e+00> : vector<128x128xf32>
    %4 = tpu.matmul %2, %3, %cst_3 {dimension_numbers = #tpu.dot_dimension_numbers<[1], [0], [0], [1], [0, 0, 1, 1], [], []>} : vector<128x384xbf16>, vector<384x128xbf16>, vector<128x128xf32> -> vector<128x128xf32>
    %c0_4 = arith.constant 0 : index
    %c0_5 = arith.constant 0 : index
    %5 = vector.load %arg3[%c0_4, %c0_5] : memref<1x128xf32, #tpu.memory_space<vmem>>, vector<1x128xf32>
    %6 = vector.broadcast %5 : vector<1x128xf32> to vector<128x128xf32>
    %7 = arith.addf %4, %6 : vector<128x128xf32>
    %cst_6 = arith.constant 0.000000e+00 : f32
    %8 = vector.broadcast %cst_6 : f32 to vector<128x128xf32>
    %9 = arith.maximumf %7, %8 : vector<128x128xf32>
    %c0_7 = arith.constant 0 : index
    %c0_8 = arith.constant 0 : index
    %10 = vector.load %arg4[%c0_7, %c0_8] : memref<128x128xf32, #tpu.memory_space<vmem>>, vector<128x128xf32>
    tpu.vector_store %arg4[%c0_7, %c0_8], %9 {strides = array<i32>} : memref<128x128xf32, #tpu.memory_space<vmem>>, vector<128x128xf32>,
    return
  }
  func.func @transform_0(%arg0: i32) -> (i32, i32) {
    %c0_i32 = arith.constant 0 : i32
    %c0_i32_0 = arith.constant 0 : i32
    return %arg0, %c0_i32 : i32, i32
  }
  func.func @transform_1(%arg0: i32) -> (i32, i32) {
    %c0_i32 = arith.constant 0 : i32
    %c0_i32_0 = arith.constant 0 : i32
    %c0_i32_1 = arith.constant 0 : i32
    return %c0_i32, %c0_i32_0 : i32, i32
  }
  func.func @transform_2(%arg0: i32) -> (i32, i32) {
    %c0_i32 = arith.constant 0 : i32
    %c0_i32_0 = arith.constant 0 : i32
    %c0_i32_1 = arith.constant 0 : i32
    return %c0_i32, %c0_i32_0 : i32, i32
  }
  func.func @transform_3(%arg0: i32) -> (i32, i32) {
    %c0_i32 = arith.constant 0 : i32
    %c0_i32_0 = arith.constant 0 : i32
    return %arg0, %c0_i32 : i32, i32
  }
}

module attributes {stable_mosaic.version = 11 : i64} {
  func.func @_gemm_res_kernel(%arg0: i32, %arg1: memref<128x128xbf16, #tpu.memory_space<vmem>>, %arg2: memref<128x128xbf16, #tpu.memory_space<vmem>>, %arg3: memref<1x128xf32, #tpu.memory_space<vmem>>, %arg4: memref<128x128xf32, #tpu.memory_space<vmem>>, %arg5: memref<128x128xf32, #tpu.memory_space<vmem>>) attributes {dimension_semantics = [#tpu.dimension_semantics<parallel>], iteration_bounds = array<i64: 1>, scalar_prefetch = 0 : i64, scratch_operands = 0 : i64, tpu.core_type = #tpu.core_type<tc>, window_params = [{transform_indices = @transform_0, window_bounds = array<i64: 128, 128>}, {pipeline_mode = #tpu.pipeline_mode<synchronous>, transform_indices = @transform_1, window_bounds = array<i64: 128, 128>}, {pipeline_mode = #tpu.pipeline_mode<synchronous>, transform_indices = @transform_2, window_bounds = array<i64: 1, 128>}, {transform_indices = @transform_3, window_bounds = array<i64: 128, 128>}, {transform_indices = @transform_4, window_bounds = array<i64: 128, 128>}]} {
    %c0 = arith.constant 0 : index
    %c0_0 = arith.constant 0 : index
    %0 = vector.load %arg1[%c0, %c0_0] : memref<128x128xbf16, #tpu.memory_space<vmem>>, vector<128x128xbf16>
    %c0_1 = arith.constant 0 : index
    %c0_2 = arith.constant 0 : index
    %1 = vector.load %arg2[%c0_1, %c0_2] : memref<128x128xbf16, #tpu.memory_space<vmem>>, vector<128x128xbf16>
    %cst = arith.constant dense<0.000000e+00> : vector<128x128xf32>
    %2 = tpu.matmul %0, %1, %cst {dimension_numbers = #tpu.dot_dimension_numbers<[1], [0], [0], [1], [0, 0, 1, 1], [], []>} : vector<128x128xbf16>, vector<128x128xbf16>, vector<128x128xf32> -> vector<128x128xf32>
    %c0_3 = arith.constant 0 : index
    %c0_4 = arith.constant 0 : index
    %3 = vector.load %arg3[%c0_3, %c0_4] : memref<1x128xf32, #tpu.memory_space<vmem>>, vector<1x128xf32>
    %4 = vector.broadcast %3 : vector<1x128xf32> to vector<128x128xf32>
    %5 = arith.addf %2, %4 : vector<128x128xf32>
    %c0_5 = arith.constant 0 : index
    %c0_6 = arith.constant 0 : index
    %6 = vector.load %arg4[%c0_5, %c0_6] : memref<128x128xf32, #tpu.memory_space<vmem>>, vector<128x128xf32>
    %7 = arith.addf %5, %6 : vector<128x128xf32>
    %c0_7 = arith.constant 0 : index
    %c0_8 = arith.constant 0 : index
    %8 = vector.load %arg5[%c0_7, %c0_8] : memref<128x128xf32, #tpu.memory_space<vmem>>, vector<128x128xf32>
    tpu.vector_store %arg5[%c0_7, %c0_8], %7 {strides = array<i32>} : memref<128x128xf32, #tpu.memory_space<vmem>>, vector<128x128xf32>,
    return
  }
  func.func @transform_0(%arg0: i32) -> (i32, i32) {
    %c0_i32 = arith.constant 0 : i32
    %c0_i32_0 = arith.constant 0 : i32
    return %arg0, %c0_i32 : i32, i32
  }
  func.func @transform_1(%arg0: i32) -> (i32, i32) {
    %c0_i32 = arith.constant 0 : i32
    %c0_i32_0 = arith.constant 0 : i32
    %c0_i32_1 = arith.constant 0 : i32
    return %c0_i32, %c0_i32_0 : i32, i32
  }
  func.func @transform_2(%arg0: i32) -> (i32, i32) {
    %c0_i32 = arith.constant 0 : i32
    %c0_i32_0 = arith.constant 0 : i32
    %c0_i32_1 = arith.constant 0 : i32
    return %c0_i32, %c0_i32_0 : i32, i32
  }
  func.func @transform_3(%arg0: i32) -> (i32, i32) {
    %c0_i32 = arith.constant 0 : i32
    %c0_i32_0 = arith.constant 0 : i32
    return %arg0, %c0_i32 : i32, i32
  }
  func.func @transform_4(%arg0: i32) -> (i32, i32) {
    %c0_i32 = arith.constant 0 : i32
    %c0_i32_0 = arith.constant 0 : i32
    return %arg0, %c0_i32 : i32, i32
  }
}

module attributes {stable_mosaic.version = 11 : i64} {
  func.func @_gemm_kernel(%arg0: i32, %arg1: memref<128x128xbf16, #tpu.memory_space<vmem>>, %arg2: memref<128x128xbf16, #tpu.memory_space<vmem>>, %arg3: memref<1x128xf32, #tpu.memory_space<vmem>>, %arg4: memref<128x128xf32, #tpu.memory_space<vmem>>) attributes {dimension_semantics = [#tpu.dimension_semantics<parallel>], iteration_bounds = array<i64: 2>, scalar_prefetch = 0 : i64, scratch_operands = 0 : i64, tpu.core_type = #tpu.core_type<tc>, window_params = [{transform_indices = @transform_0, window_bounds = array<i64: 128, 128>}, {pipeline_mode = #tpu.pipeline_mode<synchronous>, transform_indices = @transform_1, window_bounds = array<i64: 128, 128>}, {pipeline_mode = #tpu.pipeline_mode<synchronous>, transform_indices = @transform_2, window_bounds = array<i64: 1, 128>}, {transform_indices = @transform_3, window_bounds = array<i64: 128, 128>}]} {
    %c0 = arith.constant 0 : index
    %c0_0 = arith.constant 0 : index
    %0 = vector.load %arg1[%c0, %c0_0] : memref<128x128xbf16, #tpu.memory_space<vmem>>, vector<128x128xbf16>
    %cst = arith.constant 0.000000e+00 : bf16
    %1 = vector.broadcast %cst : bf16 to vector<128x128xbf16>
    %2 = arith.maximumf %0, %1 : vector<128x128xbf16>
    %c0_1 = arith.constant 0 : index
    %c0_2 = arith.constant 0 : index
    %3 = vector.load %arg2[%c0_1, %c0_2] : memref<128x128xbf16, #tpu.memory_space<vmem>>, vector<128x128xbf16>
    %cst_3 = arith.constant dense<0.000000e+00> : vector<128x128xf32>
    %4 = tpu.matmul %2, %3, %cst_3 {dimension_numbers = #tpu.dot_dimension_numbers<[1], [0], [0], [1], [0, 0, 1, 1], [], []>} : vector<128x128xbf16>, vector<128x128xbf16>, vector<128x128xf32> -> vector<128x128xf32>
    %c0_4 = arith.constant 0 : index
    %c0_5 = arith.constant 0 : index
    %5 = vector.load %arg3[%c0_4, %c0_5] : memref<1x128xf32, #tpu.memory_space<vmem>>, vector<1x128xf32>
    %6 = vector.broadcast %5 : vector<1x128xf32> to vector<128x128xf32>
    %7 = arith.addf %4, %6 : vector<128x128xf32>
    %c0_6 = arith.constant 0 : index
    %c0_7 = arith.constant 0 : index
    %8 = vector.load %arg4[%c0_6, %c0_7] : memref<128x128xf32, #tpu.memory_space<vmem>>, vector<128x128xf32>
    tpu.vector_store %arg4[%c0_6, %c0_7], %7 {strides = array<i32>} : memref<128x128xf32, #tpu.memory_space<vmem>>, vector<128x128xf32>,
    return
  }
  func.func @transform_0(%arg0: i32) -> (i32, i32) {
    %c0_i32 = arith.constant 0 : i32
    %c0_i32_0 = arith.constant 0 : i32
    return %arg0, %c0_i32 : i32, i32
  }
  func.func @transform_1(%arg0: i32) -> (i32, i32) {
    %c0_i32 = arith.constant 0 : i32
    %c0_i32_0 = arith.constant 0 : i32
    %c0_i32_1 = arith.constant 0 : i32
    return %c0_i32, %c0_i32_0 : i32, i32
  }
  func.func @transform_2(%arg0: i32) -> (i32, i32) {
    %c0_i32 = arith.constant 0 : i32
    %c0_i32_0 = arith.constant 0 : i32
    %c0_i32_1 = arith.constant 0 : i32
    return %c0_i32, %c0_i32_0 : i32, i32
  }
  func.func @transform_3(%arg0: i32) -> (i32, i32) {
    %c0_i32 = arith.constant 0 : i32
    %c0_i32_0 = arith.constant 0 : i32
    return %arg0, %c0_i32 : i32, i32
  }
}

</mosaic_0001>

<bundles_post_ra>
// kernel: ccvae_forward.22
= control target key start
LH: loop header
LB: loop body
LE: loop exit
PB: predicated region body
PF: predicated region fallthrough
CT: control target
= control target key end

     0   :  { %s639_s12 = smov 0   ;;  %s715_s0 = inlined_call_operand.vmem [shape: bf16[512,128], index: 0, kind: input, shape index: {}]   ;;  %s716_s1 = inlined_call_operand.vmem [shape: bf16[128,128], index: 1, kind: input, shape index: {}]   ;;  %s717_s2 = inlined_call_operand.vmem [shape: f32[1,128], index: 2, kind: input, shape index: {}]   ;;  %s718_s3 = inlined_call_operand.vmem [shape: f32[512,128], index: 3, kind: output, shape index: {}]  }
   0x1 LB: > { %s495_s13 = sadd.s32 4294967295, %s617_s12   ;;  %p499_p0 = scmp.ge.s32.totalorder %s617_s12, 1  ;;  %s617_s12 = sphi %s639_s12, %s13_s12  }
   0x2   : > { %p138_p1 = scmp.lt.s32.totalorder %s617_s12, 5 }
   0x4   : > { %p139_p2 = pnand %p499_p0, %p138_p1 }
   0x5   : > { %v595_v0 = vld [vmem:[%s716_s1] sm:$0xff] (!%p139_p2)   ;;  %s500_s16 = sshll.u32 (!%p139_p2), %s495_s13, 4  ;;  %v596_v1 = vld [vmem:[%s716_s1 + $0x8] sm:$0xff] (!%p139_p2)   ;;  %v597_v2 = vld [vmem:[%s716_s1 + $0x10] sm:$0xff] (!%p139_p2)  }
   0x6   : > { %142 = sbr.rel (%p139_p2) target bundleno = 266 (0x10a), region = 32  ;;  %p163_p3 = scmp.lt.s32.totalorder (!%p139_p2), %s500_s16, 63  ;;  %539 = vmatprep.subr.bf16.mxu0 (!%p139_p2), %v595_v0  ;;  %571 = vmatprep.subr.bf16.mxu1 (!%p139_p2), %v595_v0  ;;  %v598_v3 = vld [vmem:[%s716_s1 + $0x18] sm:$0xff] (!%p139_p2)   ;;  %v599_v6 = vld [vmem:[%s716_s1 + $0x20] sm:$0xff] (!%p139_p2)   ;;  %v600_v7 = vld [vmem:[%s716_s1 + $0x28] sm:$0xff] (!%p139_p2)  }
   0x7   : > { %540 = vmatpush3.bf16.msra.mxu0 (!%p139_p2), %v595_v0  ;;  %579 = vmatpush3.bf16.msra.mxu1 (!%p139_p2), %v595_v0  ;;  %v601_v8 = vld [vmem:[%s716_s1 + $0x30] sm:$0xff] (!%p139_p2)   ;;  %v602_v9 = vld [vmem:[%s716_s1 + $0x38] sm:$0xff] (!%p139_p2)   ;;  %v504_v16 = vld [vmem:[%s717_s2] ss:$0 sm:$0xff] (!%p139_p2) }
   0x8   : > { %541 = vmatprep.subr.bf16.mxu0 (!%p139_p2), %v596_v1  ;;  %572 = vmatprep.subr.bf16.mxu1 (!%p139_p2), %v596_v1 }
   0xb   : > { %542 = vmatpush3.bf16.msra.mxu0 (!%p139_p2), %v596_v1  ;;  %580 = vmatpush3.bf16.msra.mxu1 (!%p139_p2), %v596_v1 }
   0xc   : > { %543 = vmatprep.subr.bf16.mxu0 (!%p139_p2), %v597_v2  ;;  %573 = vmatprep.subr.bf16.mxu1 (!%p139_p2), %v597_v2 }
   0xd   : > { %s720_s16 = smov (!%p163_p3, %s500_s16), 63 }
   0xe   : > { %s501_s21 = sshll.u32 %s720_s16, 2  ;;  %s503_s10 = sshll.u32 %s720_s16, 3 }
   0xf   : > { %s662_s24 = scalar_lea.vmem %s715_s0, %s501_s21  ;;  %544 = vmatpush3.bf16.msra.mxu0 %v597_v2  ;;  %581 = vmatpush3.bf16.msra.mxu1 %v597_v2  ;;  %s694_s14 = scalar_lea.vmem %s718_s3, %s503_s10 }
  0x10   : > { %v603_v4 = vld [vmem:[%s662_s24] sm:$0xff]   ;;  %545 = vmatprep.subr.bf16.mxu0 %v598_v3  ;;  %574 = vmatprep.subr.bf16.mxu1 %v598_v3  ;;  %v605_v10 = vld [vmem:[%s662_s24 + $0x8] sm:$0xff]   ;;  %v607_v12 = vld [vmem:[%s662_s24 + $0x10] sm:$0xff]  }
  0x11   : > { %v604_v5 = vld [vmem:[%s662_s24 + $0x20] sm:$0xff]   ;;  %555 = vmatprep.mubr.bf16.mxu0 %v603_v4  ;;  %v606_v11 = vld [vmem:[%s662_s24 + $0x28] sm:$0xff]   ;;  %v608_v13 = vld [vmem:[%s662_s24 + $0x30] sm:$0xff]  }
  0x12   : > { %563 = vmatprep.mubr.bf16.mxu1 %v604_v5  ;;  %v609_v14 = vld [vmem:[%s662_s24 + $0x18] sm:$0xff]  }
  0x13   : > { %546 = vmatpush3.bf16.msra.mxu0 %v598_v3  ;;  %582 = vmatpush3.bf16.msra.mxu1 %v598_v3  ;;  %v610_v15 = vld [vmem:[%s662_s24 + $0x38] sm:$0xff]  }
  0x14   : > { %547 = vmatprep.subr.bf16.mxu0 %v599_v6  ;;  %575 = vmatprep.subr.bf16.mxu1 %v599_v6 }
  0x17   : > { %548 = vmatpush3.bf16.msra.mxu0 %v599_v6  ;;  %583 = vmatpush3.bf16.msra.mxu1 %v599_v6 }
  0x18   : > { %549 = vmatprep.subr.bf16.mxu0 %v600_v7  ;;  %576 = vmatprep.subr.bf16.mxu1 %v600_v7 }
  0x1b   : > { %550 = vmatpush3.bf16.msra.mxu0 %v600_v7  ;;  %584 = vmatpush3.bf16.msra.mxu1 %v600_v7 }
  0x1c   : > { %551 = vmatprep.subr.bf16.mxu0 %v601_v8  ;;  %577 = vmatprep.subr.bf16.mxu1 %v601_v8 }
  0x1f   : > { %552 = vmatpush3.bf16.msra.mxu0 %v601_v8  ;;  %585 = vmatpush3.bf16.msra.mxu1 %v601_v8 }
  0x20   : > { %553 = vmatprep.subr.bf16.mxu0 %v602_v9  ;;  %578 = vmatprep.subr.bf16.mxu1 %v602_v9 }
  0x23   : > { %554 = vmatpush3.bf16.msra.mxu0 %v602_v9  ;;  %586 = vmatpush3.bf16.msra.mxu1 %v602_v9 }
  0x26   : > { %556 = vmatmul.mubr.bf16.vlgmr.msra.gmra.mrb[0].mxu0 %v605_v10  ;;  %564 = vmatmul.mubr.bf16.vlgmr.msra.gmra.mrb[0].mxu1 %v606_v11 }
  0x27   : > { %559 = vmatprep.mubr.bf16.mxu0 %v607_v12  ;;  %567 = vmatprep.mubr.bf16.mxu1 %v608_v13 }
  0x2e   : > { %560 = vmatmul.mubr.bf16.gmra.mrb[4].mxu0 %v609_v14  ;;  %568 = vmatmul.mubr.bf16.gmra.mrb[4].mxu1 %v610_v15 }
  0xf9   : > { %v557_v17 = vpop.f32.mrb[0].mxu0  ;;  %v565_v18 = vpop.f32.mrb[0].mxu1 }
  0xfa   : > { %v353_v19 = vadd.f32 %v557_v17, %v504_v16  ;;  %v385_v20 = vadd.f32 %v565_v18, %v504_v16  ;;  %v344_v21 = vpop.f32.mrb[1].mxu0  ;;  %v376_v22 = vpop.f32.mrb[1].mxu1 }
  0xfb   : > { %v345_v23 = vadd.f32 %v504_v16, %v344_v21  ;;  %v377_v24 = vadd.f32 %v504_v16, %v376_v22  ;;  %v558_v25 = vpop.f32.mrb[2].mxu0  ;;  %v566_v26 = vpop.f32.mrb[2].mxu1 }
  0xfc   : > { %v409_v27 = vmax.f32 %v353_v19, 0.0  ;;  %v417_v28 = vmax.f32 %v385_v20, 0.0  ;;  %v356_v29 = vadd.f32 %v558_v25, %v504_v16  ;;  %v388_v30 = vadd.f32 %v566_v26, %v504_v16  ;;  %v347_v31 = vpop.f32.mrb[3].mxu0  ;;  %v379_v32 = vpop.f32.mrb[3].mxu1 }
  0xfd   : > { %v407_v33 = vmax.f32 %v345_v23, 0.0  ;;  %v415_v34 = vmax.f32 %v377_v24, 0.0  ;;  %v348_v35 = vadd.f32 %v504_v16, %v347_v31  ;;  %v380_v36 = vadd.f32 %v504_v16, %v379_v32 }
  0xfe   : > { %425 = vst [vmem:[%s694_s14 + $0x10] sm:$0xff] %v409_v27  ;;  %433 = vst [vmem:[%s694_s14 + $0x50] sm:$0xff] %v417_v28  ;;  %v410_v37 = vmax.f32 %v356_v29, 0.0  ;;  %v418_v38 = vmax.f32 %v388_v30, 0.0 }
  0xff   : > { %423 = vst [vmem:[%s694_s14] sm:$0xff] %v407_v33  ;;  %431 = vst [vmem:[%s694_s14 + $0x40] sm:$0xff] %v415_v34  ;;  %v408_v39 = vmax.f32 %v348_v35, 0.0  ;;  %v416_v40 = vmax.f32 %v380_v36, 0.0 }
 0x100   : > { %426 = vst [vmem:[%s694_s14 + $0x18] sm:$0xff] %v410_v37  ;;  %434 = vst [vmem:[%s694_s14 + $0x58] sm:$0xff] %v418_v38 }
 0x101   : > { %424 = vst [vmem:[%s694_s14 + $0x8] sm:$0xff] %v408_v39  ;;  %432 = vst [vmem:[%s694_s14 + $0x48] sm:$0xff] %v416_v40  ;;  %v561_v41 = vpop.f32.mrb[4].mxu0  ;;  %v569_v42 = vpop.f32.mrb[4].mxu1 }
 0x102   : > { %v369_v43 = vadd.f32 %v561_v41, %v504_v16  ;;  %v401_v44 = vadd.f32 %v569_v42, %v504_v16  ;;  %v360_v45 = vpop.f32.mrb[5].mxu0  ;;  %v392_v46 = vpop.f32.mrb[5].mxu1 }
 0x103   : > { %v361_v47 = vadd.f32 %v504_v16, %v360_v45  ;;  %v393_v48 = vadd.f32 %v504_v16, %v392_v46  ;;  %v562_v49 = vpop.f32.mrb[6].mxu0  ;;  %v570_v50 = vpop.f32.mrb[6].mxu1 }
 0x104   : > { %v413_v51 = vmax.f32 %v369_v43, 0.0  ;;  %v421_v52 = vmax.f32 %v401_v44, 0.0  ;;  %v372_v53 = vadd.f32 %v562_v49, %v504_v16  ;;  %v404_v54 = vadd.f32 %v570_v50, %v504_v16  ;;  %v363_v55 = vpop.f32.mrb[7].mxu0  ;;  %v395_v56 = vpop.f32.mrb[7].mxu1 }
 0x105   : > { %v411_v57 = vmax.f32 %v361_v47, 0.0  ;;  %v419_v58 = vmax.f32 %v393_v48, 0.0  ;;  %v364_v59 = vadd.f32 %v504_v16, %v363_v55  ;;  %v396_v60 = vadd.f32 %v504_v16, %v395_v56 }
 0x106   : > { %429 = vst [vmem:[%s694_s14 + $0x30] sm:$0xff] %v413_v51  ;;  %437 = vst [vmem:[%s694_s14 + $0x70] sm:$0xff] %v421_v52  ;;  %v414_v61 = vmax.f32 %v372_v53, 0.0  ;;  %v422_v62 = vmax.f32 %v404_v54, 0.0 }
 0x107   : > { %427 = vst [vmem:[%s694_s14 + $0x20] sm:$0xff] %v411_v57  ;;  %435 = vst [vmem:[%s694_s14 + $0x60] sm:$0xff] %v419_v58  ;;  %v412_v63 = vmax.f32 %v364_v59, 0.0  ;;  %v420_v0 = vmax.f32 %v396_v60, 0.0 }
 0x108   : > { %430 = vst [vmem:[%s694_s14 + $0x38] sm:$0xff] %v414_v61  ;;  %438 = vst [vmem:[%s694_s14 + $0x78] sm:$0xff] %v422_v62 }
 0x109   : > { %428 = vst [vmem:[%s694_s14 + $0x28] sm:$0xff] %v412_v63  ;;  %436 = vst [vmem:[%s694_s14 + $0x68] sm:$0xff] %v420_v0 }
 0x10a PF: > { %s13_s12 = sadd.s32 1, %s617_s12  }
 0x10b   : > { %p10_p4 = scmp.ge.s32.totalorder %s13_s12, 6  }
 0x10d   :  { %12 = sbr.rel (!%p10_p4) target bundleno = 1 (0x1), region = 62 }

// kernel: ccvae_forward.23
= control target key start
LH: loop header
LB: loop body
LE: loop exit
PB: predicated region body
PF: predicated region fallthrough
CT: control target
= control target key end

     0   :  { %s717_s1 = inlined_call_operand.vmem [shape: bf16[256,128], index: 1, kind: input, shape index: {}]   ;;  %s718_s0 = inlined_call_operand.vmem [shape: bf16[128,256], index: 0, kind: input, shape index: {}]   ;;  %s719_s2 = inlined_call_operand.vmem [shape: f32[1,128], index: 2, kind: input, shape index: {}]   ;;  %s720_s3 = inlined_call_operand.vmem [shape: f32[128,128], index: 3, kind: output, shape index: {}]  }
   0x1   :  { %v492_v0 = vld [vmem:[%s717_s1 + $0x40] sm:$0xff]   ;;  %v494_v2 = vld [vmem:[%s717_s1 + $0x48] sm:$0xff]   ;;  %v496_v4 = vld [vmem:[%s717_s1 + $0x50] sm:$0xff]  }
   0x2   :  { %v493_v1 = vld [vmem:[%s717_s1] sm:$0xff]   ;;  %412 = vmatprep.subr.bf16.mxu0 %v492_v0  ;;  %476 = vmatprep.subr.bf16.mxu1 %v492_v0  ;;  %v495_v3 = vld [vmem:[%s717_s1 + $0x8] sm:$0xff]   ;;  %v497_v5 = vld [vmem:[%s717_s1 + $0x10] sm:$0xff]  }
   0x3   :  { %413 = vmatpush3.bf16.msra.mxu0 %v493_v1  ;;  %484 = vmatpush3.bf16.msra.mxu1 %v493_v1  ;;  %v498_v6 = vld [vmem:[%s717_s1 + $0x58] sm:$0xff]   ;;  %v500_v8 = vld [vmem:[%s717_s1 + $0x60] sm:$0xff]   ;;  %v502_v10 = vld [vmem:[%s717_s1 + $0x68] sm:$0xff]  }
   0x4   :  { %414 = vmatprep.subr.bf16.mxu0 %v494_v2  ;;  %477 = vmatprep.subr.bf16.mxu1 %v494_v2  ;;  %v499_v7 = vld [vmem:[%s717_s1 + $0x18] sm:$0xff]   ;;  %v501_v9 = vld [vmem:[%s717_s1 + $0x20] sm:$0xff]   ;;  %v503_v13 = vld [vmem:[%s717_s1 + $0x28] sm:$0xff]  }
   0x5   :  { %v510_v11 = vld [vmem:[%s718_s0 + $0x4] ss:$8 sps:$4 sm:$0xff]   ;;  %v504_v14 = vld [vmem:[%s717_s1 + $0x70] sm:$0xff]   ;;  %v506_v16 = vld [vmem:[%s717_s1 + $0x78] sm:$0xff]  }
   0x6   :  { %v513_v12 = vld [vmem:[%s718_s0 + $0x44] ss:$8 sps:$4 sm:$0xff]   ;;  %278 = vmatprep.mubr.bf16.mxu0 %v510_v11  ;;  %v505_v15 = vld [vmem:[%s717_s1 + $0x30] sm:$0xff]   ;;  %v507_v17 = vld [vmem:[%s717_s1 + $0x38] sm:$0xff]  }
   0x7   :  { %415 = vmatpush3.bf16.msra.mxu0 %v495_v3  ;;  %485 = vmatpush3.bf16.msra.mxu1 %v495_v3  ;;  %v508_v18 = vld [vmem:[%s718_s0] ss:$8 sps:$4 sm:$0xff]   ;;  %v514_v20 = vld [vmem:[%s718_s0 + $0x14] ss:$8 sps:$4 sm:$0xff]   ;;  %v518_v22 = vld [vmem:[%s718_s0 + $0x10] ss:$8 sps:$4 sm:$0xff]  }
   0x8   :  { %416 = vmatprep.subr.bf16.mxu0 %v496_v4  ;;  %478 = vmatprep.subr.bf16.mxu1 %v496_v4  ;;  %v511_v19 = vld [vmem:[%s718_s0 + $0x40] ss:$8 sps:$4 sm:$0xff]   ;;  %v516_v21 = vld [vmem:[%s718_s0 + $0x54] ss:$8 sps:$4 sm:$0xff]   ;;  %v519_v23 = vld [vmem:[%s718_s0 + $0x50] ss:$8 sps:$4 sm:$0xff]  }
   0x9   :  { %310 = vmatprep.mubr.bf16.mxu1 %v513_v12  ;;  %v520_v24 = vld [vmem:[%s718_s0 + $0x24] ss:$8 sps:$4 sm:$0xff]   ;;  %v524_v26 = vld [vmem:[%s718_s0 + $0x20] ss:$8 sps:$4 sm:$0xff]   ;;  %v526_v28 = vld [vmem:[%s718_s0 + $0x34] ss:$8 sps:$4 sm:$0xff]  }
   0xa   :  { %v522_v25 = vld [vmem:[%s718_s0 + $0x64] ss:$8 sps:$4 sm:$0xff]   ;;  %v525_v27 = vld [vmem:[%s718_s0 + $0x60] ss:$8 sps:$4 sm:$0xff]   ;;  %v528_v29 = vld [vmem:[%s718_s0 + $0x74] ss:$8 sps:$4 sm:$0xff]  }
   0xb   :  { %417 = vmatpush3.bf16.msra.mxu0 %v497_v5  ;;  %486 = vmatpush3.bf16.msra.mxu1 %v497_v5  ;;  %v530_v30 = vld [vmem:[%s718_s0 + $0x30] ss:$8 sps:$4 sm:$0xff]   ;;  %v651_v34 = vld [vmem:[%s719_s2] ss:$0 sm:$0xff] }
   0xc   :  { %418 = vmatprep.subr.bf16.mxu0 %v498_v6  ;;  %479 = vmatprep.subr.bf16.mxu1 %v498_v6  ;;  %v531_v31 = vld [vmem:[%s718_s0 + $0x70] ss:$8 sps:$4 sm:$0xff]  }
   0xf   :  { %419 = vmatpush3.bf16.msra.mxu0 %v499_v7  ;;  %487 = vmatpush3.bf16.msra.mxu1 %v499_v7 }
  0x10   :  { %420 = vmatprep.subr.bf16.mxu0 %v500_v8  ;;  %480 = vmatprep.subr.bf16.mxu1 %v500_v8 }
  0x13   :  { %421 = vmatpush3.bf16.msra.mxu0 %v501_v9  ;;  %488 = vmatpush3.bf16.msra.mxu1 %v501_v9 }
  0x14   :  { %422 = vmatprep.subr.bf16.mxu0 %v502_v10  ;;  %481 = vmatprep.subr.bf16.mxu1 %v502_v10 }
  0x17   :  { %423 = vmatpush3.bf16.msra.mxu0 %v503_v13  ;;  %489 = vmatpush3.bf16.msra.mxu1 %v503_v13 }
  0x18   :  { %424 = vmatprep.subr.bf16.mxu0 %v504_v14  ;;  %482 = vmatprep.subr.bf16.mxu1 %v504_v14 }
  0x1b   :  { %425 = vmatpush3.bf16.msra.mxu0 %v505_v15  ;;  %490 = vmatpush3.bf16.msra.mxu1 %v505_v15 }
  0x1c   :  { %426 = vmatprep.subr.bf16.mxu0 %v506_v16  ;;  %483 = vmatprep.subr.bf16.mxu1 %v506_v16 }
  0x1f   :  { %427 = vmatpush3.bf16.msra.mxu0 %v507_v17  ;;  %491 = vmatpush3.bf16.msra.mxu1 %v507_v17 }
  0x22   :  { %279 = vmatmul.mubr.bf16.vlgmr.msra.gmra.mrb[0].mxu0 %v508_v18  ;;  %311 = vmatmul.mubr.bf16.vlgmr.msra.gmra.mrb[0].mxu1 %v511_v19 }
  0x23   :  { %286 = vmatprep.mubr.bf16.mxu0 %v514_v20  ;;  %318 = vmatprep.mubr.bf16.mxu1 %v516_v21 }
  0x2a   :  { %287 = vmatmul.mubr.bf16.gmra.mrb[4].mxu0 %v518_v22  ;;  %319 = vmatmul.mubr.bf16.gmra.mrb[4].mxu1 %v519_v23 }
  0x2b   :  { %294 = vmatprep.mubr.bf16.mxu0 %v520_v24  ;;  %326 = vmatprep.mubr.bf16.mxu1 %v522_v25 }
  0x32   :  { %295 = vmatmul.mubr.bf16.gmra.mrb[8].mxu0 %v524_v26  ;;  %327 = vmatmul.mubr.bf16.gmra.mrb[8].mxu1 %v525_v27 }
  0x33   :  { %302 = vmatprep.mubr.bf16.mxu0 %v526_v28  ;;  %334 = vmatprep.mubr.bf16.mxu1 %v528_v29 }
  0x3a   :  { %303 = vmatmul.mubr.bf16.gmra.mrb[12].mxu0 %v530_v30  ;;  %335 = vmatmul.mubr.bf16.gmra.mrb[12].mxu1 %v531_v31 }
  0xf5   :  { %v428_v32 = vpop.f32.mrb[0].mxu0  ;;  %v452_v33 = vpop.f32.mrb[0].mxu1 }
  0xf6   :  { %v429_v35 = vpop.f32.mrb[1].mxu0  ;;  %v453_v36 = vpop.f32.mrb[1].mxu1 }
  0xf7   :  { %v430_v37 = vadd.f32 %v429_v35, %v428_v32  ;;  %v454_v38 = vadd.f32 %v453_v36, %v452_v33  ;;  %v431_v39 = vpop.f32.mrb[2].mxu0  ;;  %v455_v40 = vpop.f32.mrb[2].mxu1 }
  0xf8   :  { %v432_v41 = vpop.f32.mrb[3].mxu0  ;;  %v456_v42 = vpop.f32.mrb[3].mxu1 }
  0xf9   :  { %v281_v43 = vadd.f32 %v430_v37, %v651_v34  ;;  %v313_v44 = vadd.f32 %v454_v38, %v651_v34  ;;  %v433_v45 = vadd.f32 %v432_v41, %v431_v39  ;;  %v457_v46 = vadd.f32 %v456_v42, %v455_v40 }
  0xfb   :  { %v343_v47 = vmax.f32 %v281_v43, 0.0  ;;  %v351_v48 = vmax.f32 %v313_v44, 0.0  ;;  %v284_v49 = vadd.f32 %v433_v45, %v651_v34  ;;  %v316_v50 = vadd.f32 %v457_v46, %v651_v34 }
  0xfd   :  { %359 = vst [vmem:[%s720_s3] sm:$0xff] %v343_v47  ;;  %367 = vst [vmem:[%s720_s3 + $0x40] sm:$0xff] %v351_v48  ;;  %v344_v51 = vmax.f32 %v284_v49, 0.0  ;;  %v352_v52 = vmax.f32 %v316_v50, 0.0  ;;  %v434_v53 = vpop.f32.mrb[4].mxu0  ;;  %v458_v54 = vpop.f32.mrb[4].mxu1 }
  0xfe   :  { %v435_v55 = vpop.f32.mrb[5].mxu0  ;;  %v459_v56 = vpop.f32.mrb[5].mxu1 }
  0xff   :  { %360 = vst [vmem:[%s720_s3 + $0x8] sm:$0xff] %v344_v51  ;;  %368 = vst [vmem:[%s720_s3 + $0x48] sm:$0xff] %v352_v52  ;;  %v436_v57 = vadd.f32 %v435_v55, %v434_v53  ;;  %v460_v58 = vadd.f32 %v459_v56, %v458_v54  ;;  %v437_v59 = vpop.f32.mrb[6].mxu0  ;;  %v461_v60 = vpop.f32.mrb[6].mxu1 }
 0x100   :  { %v438_v61 = vpop.f32.mrb[7].mxu0  ;;  %v462_v62 = vpop.f32.mrb[7].mxu1 }
 0x101   :  { %v289_v63 = vadd.f32 %v436_v57, %v651_v34  ;;  %v321_v0 = vadd.f32 %v460_v58, %v651_v34  ;;  %v439_v1 = vadd.f32 %v438_v61, %v437_v59  ;;  %v463_v2 = vadd.f32 %v462_v62, %v461_v60 }
 0x103   :  { %v345_v3 = vmax.f32 %v289_v63, 0.0  ;;  %v353_v4 = vmax.f32 %v321_v0, 0.0  ;;  %v292_v5 = vadd.f32 %v439_v1, %v651_v34  ;;  %v324_v6 = vadd.f32 %v463_v2, %v651_v34 }
 0x105   :  { %361 = vst [vmem:[%s720_s3 + $0x10] sm:$0xff] %v345_v3  ;;  %369 = vst [vmem:[%s720_s3 + $0x50] sm:$0xff] %v353_v4  ;;  %v346_v7 = vmax.f32 %v292_v5, 0.0  ;;  %v354_v8 = vmax.f32 %v324_v6, 0.0  ;;  %v440_v9 = vpop.f32.mrb[8].mxu0  ;;  %v464_v10 = vpop.f32.mrb[8].mxu1 }
 0x106   :  { %v441_v11 = vpop.f32.mrb[9].mxu0  ;;  %v465_v12 = vpop.f32.mrb[9].mxu1 }
 0x107   :  { %362 = vst [vmem:[%s720_s3 + $0x18] sm:$0xff] %v346_v7  ;;  %370 = vst [vmem:[%s720_s3 + $0x58] sm:$0xff] %v354_v8  ;;  %v442_v13 = vadd.f32 %v441_v11, %v440_v9  ;;  %v466_v14 = vadd.f32 %v465_v12, %v464_v10  ;;  %v443_v15 = vpop.f32.mrb[10].mxu0  ;;  %v467_v16 = vpop.f32.mrb[10].mxu1 }
 0x108   :  { %v444_v17 = vpop.f32.mrb[11].mxu0  ;;  %v468_v18 = vpop.f32.mrb[11].mxu1 }
 0x109   :  { %v297_v19 = vadd.f32 %v442_v13, %v651_v34  ;;  %v329_v20 = vadd.f32 %v466_v14, %v651_v34  ;;  %v445_v21 = vadd.f32 %v444_v17, %v443_v15  ;;  %v469_v22 = vadd.f32 %v468_v18, %v467_v16 }
 0x10b   :  { %v347_v23 = vmax.f32 %v297_v19, 0.0  ;;  %v355_v24 = vmax.f32 %v329_v20, 0.0  ;;  %v300_v25 = vadd.f32 %v445_v21, %v651_v34  ;;  %v332_v26 = vadd.f32 %v469_v22, %v651_v34 }
 0x10d   :  { %363 = vst [vmem:[%s720_s3 + $0x20] sm:$0xff] %v347_v23  ;;  %371 = vst [vmem:[%s720_s3 + $0x60] sm:$0xff] %v355_v24  ;;  %v348_v27 = vmax.f32 %v300_v25, 0.0  ;;  %v356_v28 = vmax.f32 %v332_v26, 0.0  ;;  %v446_v29 = vpop.f32.mrb[12].mxu0  ;;  %v470_v30 = vpop.f32.mrb[12].mxu1 }
 0x10e   :  { %v447_v31 = vpop.f32.mrb[13].mxu0  ;;  %v471_v32 = vpop.f32.mrb[13].mxu1 }
 0x10f   :  { %364 = vst [vmem:[%s720_s3 + $0x28] sm:$0xff] %v348_v27  ;;  %372 = vst [vmem:[%s720_s3 + $0x68] sm:$0xff] %v356_v28  ;;  %v448_v33 = vadd.f32 %v447_v31, %v446_v29  ;;  %v472_v35 = vadd.f32 %v471_v32, %v470_v30  ;;  %v449_v36 = vpop.f32.mrb[14].mxu0  ;;  %v473_v37 = vpop.f32.mrb[14].mxu1 }
 0x110   :  { %v450_v38 = vpop.f32.mrb[15].mxu0  ;;  %v474_v39 = vpop.f32.mrb[15].mxu1 }
 0x111   :  { %v305_v40 = vadd.f32 %v448_v33, %v651_v34  ;;  %v337_v41 = vadd.f32 %v472_v35, %v651_v34  ;;  %v451_v42 = vadd.f32 %v450_v38, %v449_v36  ;;  %v475_v43 = vadd.f32 %v474_v39, %v473_v37 }
 0x113   :  { %v349_v44 = vmax.f32 %v305_v40, 0.0  ;;  %v357_v45 = vmax.f32 %v337_v41, 0.0  ;;  %v308_v46 = vadd.f32 %v451_v42, %v651_v34  ;;  %v340_v47 = vadd.f32 %v475_v43, %v651_v34 }
 0x115   :  { %365 = vst [vmem:[%s720_s3 + $0x30] sm:$0xff] %v349_v44  ;;  %373 = vst [vmem:[%s720_s3 + $0x70] sm:$0xff] %v357_v45  ;;  %v350_v48 = vmax.f32 %v308_v46, 0.0  ;;  %v358_v49 = vmax.f32 %v340_v47, 0.0 }
 0x117   :  { %366 = vst [vmem:[%s720_s3 + $0x38] sm:$0xff] %v350_v48  ;;  %374 = vst [vmem:[%s720_s3 + $0x78] sm:$0xff] %v358_v49 }

// kernel: ccvae_forward.24
= control target key start
LH: loop header
LB: loop body
LE: loop exit
PB: predicated region body
PF: predicated region fallthrough
CT: control target
= control target key end

     0   :  { %s1038_s1 = inlined_call_operand.vmem [shape: bf16[384,128], index: 1, kind: input, shape index: {}]   ;;  %s1039_s0 = inlined_call_operand.vmem [shape: bf16[128,384], index: 0, kind: input, shape index: {}]   ;;  %s1040_s2 = inlined_call_operand.vmem [shape: f32[1,128], index: 2, kind: input, shape index: {}]   ;;  %s1041_s3 = inlined_call_operand.vmem [shape: f32[128,128], index: 3, kind: output, shape index: {}]  }
   0x1   :  { %v749_v0 = vld [vmem:[%s1038_s1 + $0x40] sm:$0xff]   ;;  %v751_v2 = vld [vmem:[%s1038_s1 + $0x48] sm:$0xff]   ;;  %v754_v5 = vld [vmem:[%s1038_s1 + $0x50] sm:$0xff]  }
   0x2   :  { %v750_v1 = vld [vmem:[%s1038_s1] sm:$0xff]   ;;  %637 = vmatprep.subr.bf16.mxu0 %v749_v0  ;;  %v753_v4 = vld [vmem:[%s1038_s1 + $0x8] sm:$0xff]   ;;  %v756_v7 = vld [vmem:[%s1038_s1 + $0x10] sm:$0xff]  }
   0x3   :  { %638 = vmatpush3.bf16.msra.mxu0 %v750_v1  ;;  %v752_v3 = vld [vmem:[%s1038_s1 + $0x80] sm:$0xff]   ;;  %v755_v6 = vld [vmem:[%s1038_s1 + $0x88] sm:$0xff]   ;;  %v757_v8 = vld [vmem:[%s1038_s1 + $0x58] sm:$0xff]  }
   0x4   :  { %639 = vmatprep.subr.bf16.mxu0 %v751_v2  ;;  %717 = vmatprep.subr.bf16.mxu1 %v752_v3  ;;  %v758_v9 = vld [vmem:[%s1038_s1 + $0x90] sm:$0xff]   ;;  %v759_v10 = vld [vmem:[%s1038_s1 + $0x18] sm:$0xff]   ;;  %v760_v11 = vld [vmem:[%s1038_s1 + $0x60] sm:$0xff]  }
   0x5   :  { %718 = vmatpush3.bf16.msra.mxu1 %v752_v3  ;;  %v761_v12 = vld [vmem:[%s1038_s1 + $0x98] sm:$0xff]   ;;  %v762_v13 = vld [vmem:[%s1038_s1 + $0x20] sm:$0xff]   ;;  %v763_v15 = vld [vmem:[%s1038_s1 + $0x68] sm:$0xff]  }
   0x6   :  { %719 = vmatprep.subr.bf16.mxu1 %v755_v6  ;;  %v764_v14 = vld [vmem:[%s1038_s1 + $0xa0] sm:$0xff]   ;;  %v765_v16 = vld [vmem:[%s1038_s1 + $0x28] sm:$0xff]   ;;  %v766_v18 = vld [vmem:[%s1038_s1 + $0x70] sm:$0xff]  }
   0x7   :  { %640 = vmatpush3.bf16.msra.mxu0 %v753_v4  ;;  %v767_v17 = vld [vmem:[%s1038_s1 + $0xa8] sm:$0xff]   ;;  %v768_v19 = vld [vmem:[%s1038_s1 + $0x30] sm:$0xff]   ;;  %v769_v20 = vld [vmem:[%s1038_s1 + $0x78] sm:$0xff]  }
   0x8   :  { %641 = vmatprep.subr.bf16.mxu0 %v754_v5  ;;  %v770_v21 = vld [vmem:[%s1038_s1 + $0xb0] sm:$0xff]   ;;  %v771_v23 = vld [vmem:[%s1038_s1 + $0x38] sm:$0xff]   ;;  %v772_v26 = vld [vmem:[%s1039_s0] ss:$12 sps:$4 sm:$0xff]  }
   0x9   :  { %720 = vmatpush3.bf16.msra.mxu1 %v755_v6  ;;  %v774_v22 = vld [vmem:[%s1039_s0 + $0x4] ss:$12 sps:$4 sm:$0xff]   ;;  %v776_v24 = vld [vmem:[%s1039_s0 + $0x8] ss:$12 sps:$4 sm:$0xff]   ;;  %v775_v25 = vld [vmem:[%s1038_s1 + $0xb8] sm:$0xff]  }
   0xa   :  { %721 = vmatprep.subr.bf16.mxu1 %v758_v9  ;;  %406 = vmatprep.mubr.bf16.mxu0 %v774_v22  ;;  %v778_v27 = vld [vmem:[%s1039_s0 + $0x1c] ss:$12 sps:$4 sm:$0xff]   ;;  %v777_v28 = vld [vmem:[%s1039_s0 + $0x20] ss:$12 sps:$4 sm:$0xff]   ;;  %v784_v29 = vld [vmem:[%s1039_s0 + $0x38] ss:$12 sps:$4 sm:$0xff]  }
   0xb   :  { %642 = vmatpush3.bf16.msra.mxu0 %v756_v7  ;;  %733 = vmatprep.mubr.bf16.mxu1 %v776_v24  ;;  %v780_v30 = vld [vmem:[%s1039_s0 + $0x18] ss:$12 sps:$4 sm:$0xff]   ;;  %v781_v31 = vld [vmem:[%s1039_s0 + $0x34] ss:$12 sps:$4 sm:$0xff]   ;;  %v785_v32 = vld [vmem:[%s1039_s0 + $0x50] ss:$12 sps:$4 sm:$0xff]  }
   0xc   :  { %643 = vmatprep.subr.bf16.mxu0 %v757_v8  ;;  %v792_v33 = vld [vmem:[%s1039_s0 + $0x68] ss:$12 sps:$4 sm:$0xff]   ;;  %v783_v34 = vld [vmem:[%s1039_s0 + $0x30] ss:$12 sps:$4 sm:$0xff]   ;;  %v786_v35 = vld [vmem:[%s1039_s0 + $0x4c] ss:$12 sps:$4 sm:$0xff]  }
   0xd   :  { %722 = vmatpush3.bf16.msra.mxu1 %v758_v9  ;;  %v793_v36 = vld [vmem:[%s1039_s0 + $0x80] ss:$12 sps:$4 sm:$0xff]   ;;  %v800_v37 = vld [vmem:[%s1039_s0 + $0x98] ss:$12 sps:$4 sm:$0xff]   ;;  %v788_v38 = vld [vmem:[%s1039_s0 + $0x48] ss:$12 sps:$4 sm:$0xff]  }
   0xe   :  { %723 = vmatprep.subr.bf16.mxu1 %v761_v12  ;;  %v789_v39 = vld [vmem:[%s1039_s0 + $0x64] ss:$12 sps:$4 sm:$0xff]   ;;  %v791_v41 = vld [vmem:[%s1039_s0 + $0x60] ss:$12 sps:$4 sm:$0xff]   ;;  %v794_v42 = vld [vmem:[%s1039_s0 + $0x7c] ss:$12 sps:$4 sm:$0xff]  }
   0xf   :  { %644 = vmatpush3.bf16.msra.mxu0 %v759_v10  ;;  %v801_v40 = vld [vmem:[%s1039_s0 + $0xb0] ss:$12 sps:$4 sm:$0xff]   ;;  %v796_v43 = vld [vmem:[%s1039_s0 + $0x78] ss:$12 sps:$4 sm:$0xff]   ;;  %v797_v44 = vld [vmem:[%s1039_s0 + $0x94] ss:$12 sps:$4 sm:$0xff]  }
  0x10   :  { %645 = vmatprep.subr.bf16.mxu0 %v760_v11  ;;  %v799_v45 = vld [vmem:[%s1039_s0 + $0x90] ss:$12 sps:$4 sm:$0xff]   ;;  %v802_v46 = vld [vmem:[%s1039_s0 + $0xac] ss:$12 sps:$4 sm:$0xff]   ;;  %v804_v47 = vld [vmem:[%s1039_s0 + $0xa8] ss:$12 sps:$4 sm:$0xff]  }
  0x11   :  { %724 = vmatpush3.bf16.msra.mxu1 %v761_v12  ;;  %v972_v50 = vld [vmem:[%s1040_s2] ss:$0 sm:$0xff] }
  0x12   :  { %725 = vmatprep.subr.bf16.mxu1 %v764_v14 }
  0x13   :  { %646 = vmatpush3.bf16.msra.mxu0 %v762_v13 }
  0x14   :  { %647 = vmatprep.subr.bf16.mxu0 %v763_v15 }
  0x15   :  { %726 = vmatpush3.bf16.msra.mxu1 %v764_v14 }
  0x16   :  { %727 = vmatprep.subr.bf16.mxu1 %v767_v17 }
  0x17   :  { %648 = vmatpush3.bf16.msra.mxu0 %v765_v16 }
  0x18   :  { %649 = vmatprep.subr.bf16.mxu0 %v766_v18 }
  0x19   :  { %728 = vmatpush3.bf16.msra.mxu1 %v767_v17 }
  0x1a   :  { %729 = vmatprep.subr.bf16.mxu1 %v770_v21 }
  0x1b   :  { %650 = vmatpush3.bf16.msra.mxu0 %v768_v19 }
  0x1c   :  { %651 = vmatprep.subr.bf16.mxu0 %v769_v20 }
  0x1d   :  { %730 = vmatpush3.bf16.msra.mxu1 %v770_v21 }
  0x1e   :  { %731 = vmatprep.subr.bf16.mxu1 %v775_v25 }
  0x1f   :  { %652 = vmatpush3.bf16.msra.mxu0 %v771_v23 }
  0x21   :  { %732 = vmatpush3.bf16.msra.mxu1 %v775_v25 }
  0x22   :  { %407 = vmatmul.mubr.bf16.vlgmr.msra.gmra.mrb[0].mxu0 %v772_v26 }
  0x23   :  { %414 = vmatprep.mubr.bf16.mxu0 %v778_v27 }
  0x24   :  { %734 = vmatmul.mubr.bf16.vlgmr.msra.gmra.mrb[0].mxu1 %v777_v28 }
  0x25   :  { %737 = vmatprep.mubr.bf16.mxu1 %v784_v29 }
  0x2a   :  { %415 = vmatmul.mubr.bf16.gmra.mrb[4].mxu0 %v780_v30 }
  0x2b   :  { %422 = vmatprep.mubr.bf16.mxu0 %v781_v31 }
  0x2c   :  { %738 = vmatmul.mubr.bf16.gmra.mrb[4].mxu1 %v785_v32 }
  0x2d   :  { %741 = vmatprep.mubr.bf16.mxu1 %v792_v33 }
  0x32   :  { %423 = vmatmul.mubr.bf16.gmra.mrb[8].mxu0 %v783_v34 }
  0x33   :  { %430 = vmatprep.mubr.bf16.mxu0 %v786_v35 }
  0x34   :  { %742 = vmatmul.mubr.bf16.gmra.mrb[8].mxu1 %v793_v36 }
  0x35   :  { %745 = vmatprep.mubr.bf16.mxu1 %v800_v37 }
  0x3a   :  { %431 = vmatmul.mubr.bf16.gmra.mrb[12].mxu0 %v788_v38 }
  0x3b   :  { %438 = vmatprep.mubr.bf16.mxu0 %v789_v39 }
  0x3c   :  { %746 = vmatmul.mubr.bf16.gmra.mrb[12].mxu1 %v801_v40 }
  0x42   :  { %439 = vmatmul.mubr.bf16.gmra.mrb[16].mxu0 %v791_v41 }
  0x43   :  { %446 = vmatprep.mubr.bf16.mxu0 %v794_v42 }
  0x4a   :  { %447 = vmatmul.mubr.bf16.gmra.mrb[20].mxu0 %v796_v43 }
  0x4b   :  { %454 = vmatprep.mubr.bf16.mxu0 %v797_v44 }
  0x52   :  { %455 = vmatmul.mubr.bf16.gmra.mrb[24].mxu0 %v799_v45 }
  0x53   :  { %462 = vmatprep.mubr.bf16.mxu0 %v802_v46 }
  0x5a   :  { %463 = vmatmul.mubr.bf16.gmra.mrb[28].mxu0 %v804_v47 }
  0xf5   :  { %v653_v48 = vpop.f32.mrb[0].mxu0 }
  0xf6   :  { %v654_v49 = vpop.f32.mrb[1].mxu0 }
  0xf7   :  { %v655_v51 = vadd.f32 %v654_v49, %v653_v48  ;;  %v656_v52 = vpop.f32.mrb[2].mxu0  ;;  %v735_v54 = vpop.f32.mrb[0].mxu1 }
  0xf8   :  { %v657_v53 = vpop.f32.mrb[3].mxu0  ;;  %v505_v57 = vpop.f32.mrb[1].mxu1 }
  0xf9   :  { %v658_v55 = vadd.f32 %v657_v53, %v656_v52  ;;  %v409_v56 = vadd.f32 %v655_v51, %v972_v50  ;;  %v736_v58 = vpop.f32.mrb[2].mxu1 }
  0xfa   :  { %v508_v61 = vpop.f32.mrb[3].mxu1 }
  0xfb   :  { %v506_v59 = vadd.f32 %v505_v57, %v409_v56  ;;  %v412_v60 = vadd.f32 %v658_v55, %v972_v50 }
  0xfd   :  { %568 = vst [vmem:[%s1041_s3] sm:$0xff] %v506_v59  ;;  %v509_v62 = vadd.f32 %v508_v61, %v412_v60  ;;  %v659_v63 = vpop.f32.mrb[4].mxu0 }
  0xfe   :  { %v660_v0 = vpop.f32.mrb[5].mxu0 }
  0xff   :  { %569 = vst [vmem:[%s1041_s3 + $0x8] sm:$0xff] %v509_v62  ;;  %v661_v1 = vadd.f32 %v660_v0, %v659_v63  ;;  %v662_v2 = vpop.f32.mrb[6].mxu0  ;;  %v739_v4 = vpop.f32.mrb[4].mxu1 }
 0x100   :  { %v663_v3 = vpop.f32.mrb[7].mxu0  ;;  %v521_v7 = vpop.f32.mrb[5].mxu1 }
 0x101   :  { %v417_v5 = vadd.f32 %v661_v1, %v972_v50  ;;  %v664_v6 = vadd.f32 %v663_v3, %v662_v2  ;;  %v740_v8 = vpop.f32.mrb[6].mxu1 }
 0x102   :  { %v524_v11 = vpop.f32.mrb[7].mxu1 }
 0x103   :  { %v514_v9 = vadd.f32 %v735_v54, %v417_v5  ;;  %v420_v10 = vadd.f32 %v664_v6, %v972_v50 }
 0x105   :  { %570 = vst [vmem:[%s1041_s3 + $0x10] sm:$0xff] %v514_v9  ;;  %v517_v12 = vadd.f32 %v736_v58, %v420_v10  ;;  %v665_v13 = vpop.f32.mrb[8].mxu0 }
 0x106   :  { %v666_v14 = vpop.f32.mrb[9].mxu0 }
 0x107   :  { %571 = vst [vmem:[%s1041_s3 + $0x18] sm:$0xff] %v517_v12  ;;  %v667_v15 = vadd.f32 %v666_v14, %v665_v13  ;;  %v668_v16 = vpop.f32.mrb[10].mxu0  ;;  %v743_v18 = vpop.f32.mrb[8].mxu1 }
 0x108   :  { %v669_v17 = vpop.f32.mrb[11].mxu0  ;;  %v537_v21 = vpop.f32.mrb[9].mxu1 }
 0x109   :  { %v670_v19 = vadd.f32 %v669_v17, %v668_v16  ;;  %v425_v20 = vadd.f32 %v667_v15, %v972_v50  ;;  %v744_v22 = vpop.f32.mrb[10].mxu1 }
 0x10a   :  { %v540_v25 = vpop.f32.mrb[11].mxu1 }
 0x10b   :  { %v522_v23 = vadd.f32 %v521_v7, %v425_v20  ;;  %v428_v24 = vadd.f32 %v670_v19, %v972_v50 }
 0x10d   :  { %572 = vst [vmem:[%s1041_s3 + $0x20] sm:$0xff] %v522_v23  ;;  %v525_v26 = vadd.f32 %v524_v11, %v428_v24  ;;  %v671_v27 = vpop.f32.mrb[12].mxu0 }
 0x10e   :  { %v672_v28 = vpop.f32.mrb[13].mxu0 }
 0x10f   :  { %573 = vst [vmem:[%s1041_s3 + $0x28] sm:$0xff] %v525_v26  ;;  %v673_v29 = vadd.f32 %v672_v28, %v671_v27  ;;  %v674_v30 = vpop.f32.mrb[14].mxu0  ;;  %v747_v32 = vpop.f32.mrb[12].mxu1 }
 0x110   :  { %v675_v31 = vpop.f32.mrb[15].mxu0  ;;  %v553_v35 = vpop.f32.mrb[13].mxu1 }
 0x111   :  { %v433_v33 = vadd.f32 %v673_v29, %v972_v50  ;;  %v676_v34 = vadd.f32 %v675_v31, %v674_v30  ;;  %v748_v36 = vpop.f32.mrb[14].mxu1 }
 0x112   :  { %v556_v39 = vpop.f32.mrb[15].mxu1 }
 0x113   :  { %v530_v37 = vadd.f32 %v739_v4, %v433_v33  ;;  %v436_v38 = vadd.f32 %v676_v34, %v972_v50 }
 0x115   :  { %574 = vst [vmem:[%s1041_s3 + $0x30] sm:$0xff] %v530_v37  ;;  %v533_v40 = vadd.f32 %v740_v8, %v436_v38  ;;  %v677_v41 = vpop.f32.mrb[16].mxu0 }
 0x116   :  { %v678_v42 = vpop.f32.mrb[17].mxu0 }
 0x117   :  { %575 = vst [vmem:[%s1041_s3 + $0x38] sm:$0xff] %v533_v40  ;;  %v679_v43 = vadd.f32 %v678_v42, %v677_v41  ;;  %v680_v44 = vpop.f32.mrb[18].mxu0 }
 0x118   :  { %v681_v45 = vpop.f32.mrb[19].mxu0 }
 0x119   :  { %v682_v46 = vadd.f32 %v681_v45, %v680_v44  ;;  %v441_v47 = vadd.f32 %v679_v43, %v972_v50 }
 0x11b   :  { %v538_v48 = vadd.f32 %v537_v21, %v441_v47  ;;  %v444_v49 = vadd.f32 %v682_v46, %v972_v50 }
 0x11d   :  { %576 = vst [vmem:[%s1041_s3 + $0x40] sm:$0xff] %v538_v48  ;;  %v541_v51 = vadd.f32 %v540_v25, %v444_v49  ;;  %v683_v52 = vpop.f32.mrb[20].mxu0 }
 0x11e   :  { %v684_v53 = vpop.f32.mrb[21].mxu0 }
 0x11f   :  { %577 = vst [vmem:[%s1041_s3 + $0x48] sm:$0xff] %v541_v51  ;;  %v685_v54 = vadd.f32 %v684_v53, %v683_v52  ;;  %v686_v55 = vpop.f32.mrb[22].mxu0 }
 0x120   :  { %v687_v56 = vpop.f32.mrb[23].mxu0 }
 0x121   :  { %v449_v57 = vadd.f32 %v685_v54, %v972_v50  ;;  %v688_v58 = vadd.f32 %v687_v56, %v686_v55 }
 0x123   :  { %v546_v59 = vadd.f32 %v743_v18, %v449_v57  ;;  %v452_v60 = vadd.f32 %v688_v58, %v972_v50 }
 0x125   :  { %578 = vst [vmem:[%s1041_s3 + $0x50] sm:$0xff] %v546_v59  ;;  %v549_v61 = vadd.f32 %v744_v22, %v452_v60  ;;  %v689_v62 = vpop.f32.mrb[24].mxu0 }
 0x126   :  { %v690_v63 = vpop.f32.mrb[25].mxu0 }
 0x127   :  { %579 = vst [vmem:[%s1041_s3 + $0x58] sm:$0xff] %v549_v61  ;;  %v691_v0 = vadd.f32 %v690_v63, %v689_v62  ;;  %v692_v1 = vpop.f32.mrb[26].mxu0 }
 0x128   :  { %v693_v2 = vpop.f32.mrb[27].mxu0 }
 0x129   :  { %v694_v3 = vadd.f32 %v693_v2, %v692_v1  ;;  %v457_v4 = vadd.f32 %v691_v0, %v972_v50 }
 0x12b   :  { %v554_v5 = vadd.f32 %v553_v35, %v457_v4  ;;  %v460_v6 = vadd.f32 %v694_v3, %v972_v50 }
 0x12d   :  { %580 = vst [vmem:[%s1041_s3 + $0x60] sm:$0xff] %v554_v5  ;;  %v557_v7 = vadd.f32 %v556_v39, %v460_v6  ;;  %v695_v8 = vpop.f32.mrb[28].mxu0 }
 0x12e   :  { %v696_v9 = vpop.f32.mrb[29].mxu0 }
 0x12f   :  { %581 = vst [vmem:[%s1041_s3 + $0x68] sm:$0xff] %v557_v7  ;;  %v697_v10 = vadd.f32 %v696_v9, %v695_v8  ;;  %v698_v11 = vpop.f32.mrb[30].mxu0 }
 0x130   :  { %v699_v12 = vpop.f32.mrb[31].mxu0 }
 0x131   :  { %v465_v13 = vadd.f32 %v697_v10, %v972_v50  ;;  %v700_v14 = vadd.f32 %v699_v12, %v698_v11 }
 0x133   :  { %v562_v15 = vadd.f32 %v747_v32, %v465_v13  ;;  %v468_v16 = vadd.f32 %v700_v14, %v972_v50 }
 0x135   :  { %582 = vst [vmem:[%s1041_s3 + $0x70] sm:$0xff] %v562_v15  ;;  %v565_v17 = vadd.f32 %v748_v36, %v468_v16 }
 0x137   :  { %583 = vst [vmem:[%s1041_s3 + $0x78] sm:$0xff] %v565_v17 }

// kernel: ccvae_forward.25
= control target key start
LH: loop header
LB: loop body
LE: loop exit
PB: predicated region body
PF: predicated region fallthrough
CT: control target
= control target key end

     0   :  { %v822_v24 = vmov 0   ;;  %s1115_s1 = inlined_call_operand.vmem [shape: bf16[384,128], index: 1, kind: input, shape index: {}]   ;;  %s1116_s0 = inlined_call_operand.vmem [shape: bf16[128,384], index: 0, kind: input, shape index: {}]   ;;  %s1117_s2 = inlined_call_operand.vmem [shape: f32[1,128], index: 2, kind: input, shape index: {}]   ;;  %s1118_s3 = inlined_call_operand.vmem [shape: f32[128,128], index: 3, kind: output, shape index: {}]  }
   0x1   :  { %v798_v0 = vld [vmem:[%s1115_s1 + $0x40] sm:$0xff]   ;;  %v800_v2 = vld [vmem:[%s1115_s1 + $0x48] sm:$0xff]   ;;  %v803_v5 = vld [vmem:[%s1115_s1 + $0x50] sm:$0xff]  }
   0x2   :  { %v799_v1 = vld [vmem:[%s1115_s1] sm:$0xff]   ;;  %685 = vmatprep.subr.bf16.mxu0 %v798_v0  ;;  %v802_v4 = vld [vmem:[%s1115_s1 + $0x8] sm:$0xff]   ;;  %v805_v7 = vld [vmem:[%s1115_s1 + $0x10] sm:$0xff]  }
   0x3   :  { %686 = vmatpush3.bf16.msra.mxu0 %v799_v1  ;;  %v801_v3 = vld [vmem:[%s1115_s1 + $0x80] sm:$0xff]   ;;  %v804_v6 = vld [vmem:[%s1115_s1 + $0x88] sm:$0xff]   ;;  %v806_v8 = vld [vmem:[%s1115_s1 + $0x58] sm:$0xff]  }
   0x4   :  { %687 = vmatprep.subr.bf16.mxu0 %v800_v2  ;;  %765 = vmatprep.subr.bf16.mxu1 %v801_v3  ;;  %v807_v9 = vld [vmem:[%s1115_s1 + $0x90] sm:$0xff]   ;;  %v808_v10 = vld [vmem:[%s1115_s1 + $0x18] sm:$0xff]   ;;  %v809_v11 = vld [vmem:[%s1115_s1 + $0x60] sm:$0xff]  }
   0x5   :  { %766 = vmatpush3.bf16.msra.mxu1 %v801_v3  ;;  %v810_v12 = vld [vmem:[%s1115_s1 + $0x98] sm:$0xff]   ;;  %v811_v13 = vld [vmem:[%s1115_s1 + $0x20] sm:$0xff]   ;;  %v812_v15 = vld [vmem:[%s1115_s1 + $0x68] sm:$0xff]  }
   0x6   :  { %767 = vmatprep.subr.bf16.mxu1 %v804_v6  ;;  %v813_v14 = vld [vmem:[%s1115_s1 + $0xa0] sm:$0xff]   ;;  %v814_v16 = vld [vmem:[%s1115_s1 + $0x28] sm:$0xff]   ;;  %v815_v18 = vld [vmem:[%s1115_s1 + $0x70] sm:$0xff]  }
   0x7   :  { %688 = vmatpush3.bf16.msra.mxu0 %v802_v4  ;;  %v816_v17 = vld [vmem:[%s1115_s1 + $0xa8] sm:$0xff]   ;;  %v817_v19 = vld [vmem:[%s1115_s1 + $0x30] sm:$0xff]   ;;  %v15_v21 = vld [vmem:[%s1116_s0] sm:$0xff] }
   0x8   :  { %689 = vmatprep.subr.bf16.mxu0 %v803_v5  ;;  %v819_v20 = vld [vmem:[%s1115_s1 + $0xb0] sm:$0xff]   ;;  %v818_v23 = vld [vmem:[%s1115_s1 + $0x78] sm:$0xff]   ;;  %v47_v25 = vmax.bf16 %v822_v24, %v15_v21  ;;  %v16_v27 = vld [vmem:[%s1116_s0 + $0x8] sm:$0xf] }
   0x9   :  { %768 = vmatpush3.bf16.msra.mxu1 %v804_v6  ;;  %v17_v22 = vld [vmem:[%s1116_s0 + $0xc] sm:$0xff]  ;;  %v820_v28 = vld [vmem:[%s1115_s1 + $0x38] sm:$0xff]   ;;  %v18_v29 = vld [vmem:[%s1116_s0 + $0x14] sm:$0xf]  ;;  %v48_v30 = vmax.bf16 %v822_v24, %v16_v27 }
   0xa   :  { %769 = vmatprep.subr.bf16.mxu1 %v807_v9  ;;  %v49_v26 = vmax.bf16 %v822_v24, %v17_v22  ;;  %v20_v31 = vld [vmem:[%s1116_s0 + $0x20] sm:$0xf]  ;;  %v50_v33 = vmax.bf16 %v822_v24, %v18_v29  ;;  %v22_v34 = vld [vmem:[%s1116_s0 + $0x2c] sm:$0xf]  ;;  %v19_v35 = vld [vmem:[%s1116_s0 + $0x18] sm:$0xff] }
   0xb   :  { %690 = vmatpush3.bf16.msra.mxu0 %v805_v7  ;;  %v21_v36 = vld [vmem:[%s1116_s0 + $0x24] sm:$0xff]  ;;  %v821_v37 = vld [vmem:[%s1115_s1 + $0xb8] sm:$0xff]   ;;  %v51_v38 = vmax.bf16 %v822_v24, %v19_v35  ;;  %v52_v43 = vmax.bf16 %v822_v24, %v20_v31  ;;  %v54_v44 = vmax.bf16 %v822_v24, %v22_v34  ;;  %v23_v49 = vld [vmem:[%s1116_s0 + $0x30] sm:$0xff] }
   0xc   :  { %691 = vmatprep.subr.bf16.mxu0 %v806_v8  ;;  %v638_v32 = vcombine.high %v47_v25, %v49_v26  ;;  %v53_v39 = vmax.bf16 %v822_v24, %v21_v36  ;;  %v24_v40 = vld [vmem:[%s1116_s0 + $0x38] sm:$0xf]  ;;  %v26_v41 = vld [vmem:[%s1116_s0 + $0x44] sm:$0xf]  ;;  %v639_v42 = vcombine.low %v48_v30, %v50_v33  ;;  %v637_v45 = vcombine.low %v47_v25, %v49_v26  ;;  %v25_v50 = vld [vmem:[%s1116_s0 + $0x3c] sm:$0xff] }
   0xd   :  { %770 = vmatpush3.bf16.msra.mxu1 %v807_v9  ;;  %v56_v46 = vmax.bf16 %v822_v24, %v24_v40  ;;  %v58_v47 = vmax.bf16 %v822_v24, %v26_v41  ;;  %v642_v51 = vcombine.low %v52_v43, %v54_v44  ;;  %v28_v53 = vld [vmem:[%s1116_s0 + $0x50] sm:$0xf]  ;;  %v30_v54 = vld [vmem:[%s1116_s0 + $0x5c] sm:$0xf]  ;;  %v55_v55 = vmax.bf16 %v822_v24, %v23_v49  ;;  %v32_v57 = vld [vmem:[%s1116_s0 + $0x68] sm:$0xf] }
   0xe   :  { %771 = vmatprep.subr.bf16.mxu1 %v810_v12  ;;  %438 = vmatprep.mubr.bf16.mxu0 %v638_v32  ;;  %v641_v48 = vcombine.high %v51_v38, %v53_v39  ;;  %v57_v56 = vmax.bf16 %v822_v24, %v25_v50  ;;  %v34_v58 = vld [vmem:[%s1116_s0 + $0x74] sm:$0xf]  ;;  %v60_v59 = vmax.bf16 %v822_v24, %v28_v53  ;;  %v27_v1 = vld [vmem:[%s1116_s0 + $0x48] sm:$0xff]  ;;  %v36_v5 = vld [vmem:[%s1116_s0 + $0x80] sm:$0xf] }
   0xf   :  { %692 = vmatpush3.bf16.msra.mxu0 %v808_v10  ;;  %781 = vmatprep.mubr.bf16.mxu1 %v639_v42  ;;  %v645_v52 = vcombine.low %v56_v46, %v58_v47  ;;  %v62_v60 = vmax.bf16 %v822_v24, %v30_v54  ;;  %v640_v61 = vcombine.low %v51_v38, %v53_v39  ;;  %v29_v2 = vld [vmem:[%s1116_s0 + $0x54] sm:$0xff]  ;;  %v38_v6 = vld [vmem:[%s1116_s0 + $0x8c] sm:$0xf]  ;;  %v42_v10 = vld [vmem:[%s1116_s0 + $0xa4] sm:$0xf] }
  0x10   :  { %693 = vmatprep.subr.bf16.mxu0 %v809_v11  ;;  %v64_v62 = vmax.bf16 %v822_v24, %v32_v57  ;;  %v66_v63 = vmax.bf16 %v822_v24, %v34_v58  ;;  %v644_v0 = vcombine.high %v55_v55, %v57_v56  ;;  %v59_v7 = vmax.bf16 %v822_v24, %v27_v1  ;;  %v40_v9 = vld [vmem:[%s1116_s0 + $0x98] sm:$0xf]  ;;  %v44_v21 = vld [vmem:[%s1116_s0 + $0xb0] sm:$0xf]  ;;  %v46_v22 = vld [vmem:[%s1116_s0 + $0xbc] sm:$0xf] }
  0x11   :  { %772 = vmatpush3.bf16.msra.mxu1 %v810_v12  ;;  %v648_v3 = vcombine.low %v60_v59, %v62_v60  ;;  %v61_v8 = vmax.bf16 %v822_v24, %v29_v2  ;;  %v68_v11 = vmax.bf16 %v822_v24, %v36_v5  ;;  %v70_v12 = vmax.bf16 %v822_v24, %v38_v6  ;;  %v35_v30 = vld [vmem:[%s1116_s0 + $0x78] sm:$0xff]  ;;  %v37_v31 = vld [vmem:[%s1116_s0 + $0x84] sm:$0xff] }
  0x12   :  { %773 = vmatprep.subr.bf16.mxu1 %v813_v14  ;;  %v651_v4 = vcombine.low %v64_v62, %v66_v63  ;;  %v76_v26 = vmax.bf16 %v822_v24, %v44_v21  ;;  %v78_v27 = vmax.bf16 %v822_v24, %v46_v22  ;;  %v67_v33 = vmax.bf16 %v822_v24, %v35_v30  ;;  %v41_v38 = vld [vmem:[%s1116_s0 + $0x9c] sm:$0xff]  ;;  %v43_v43 = vld [vmem:[%s1116_s0 + $0xa8] sm:$0xff]  ;;  %v45_v44 = vld [vmem:[%s1116_s0 + $0xb4] sm:$0xff] }
  0x13   :  { %694 = vmatpush3.bf16.msra.mxu0 %v811_v13  ;;  %v643_v13 = vcombine.low %v55_v55, %v57_v56  ;;  %v69_v34 = vmax.bf16 %v822_v24, %v37_v31  ;;  %v73_v40 = vmax.bf16 %v822_v24, %v41_v38  ;;  %v77_v46 = vmax.bf16 %v822_v24, %v45_v44 }
  0x14   :  { %695 = vmatprep.subr.bf16.mxu0 %v812_v15  ;;  %v74_v15 = vmax.bf16 %v822_v24, %v42_v10  ;;  %v660_v32 = vcombine.low %v76_v26, %v78_v27 }
  0x15   :  { %774 = vmatpush3.bf16.msra.mxu1 %v813_v14  ;;  %v72_v14 = vmax.bf16 %v822_v24, %v40_v9  ;;  %v653_v36 = vcombine.high %v67_v33, %v69_v34  ;;  %v652_v41 = vcombine.low %v67_v33, %v69_v34 }
  0x16   :  { %775 = vmatprep.subr.bf16.mxu1 %v816_v17 }
  0x17   :  { %696 = vmatpush3.bf16.msra.mxu0 %v814_v16  ;;  %v647_v16 = vcombine.high %v59_v7, %v61_v8 }
  0x18   :  { %697 = vmatprep.subr.bf16.mxu0 %v815_v18  ;;  %v33_v18 = vld [vmem:[%s1116_s0 + $0x6c] sm:$0xff] }
  0x19   :  { %776 = vmatpush3.bf16.msra.mxu1 %v816_v17  ;;  %v31_v17 = vld [vmem:[%s1116_s0 + $0x60] sm:$0xff]  ;;  %v65_v25 = vmax.bf16 %v822_v24, %v33_v18 }
  0x1a   :  { %777 = vmatprep.subr.bf16.mxu1 %v819_v20 }
  0x1b   :  { %698 = vmatpush3.bf16.msra.mxu0 %v817_v19  ;;  %v654_v19 = vcombine.low %v68_v11, %v70_v12 }
  0x1c   :  { %699 = vmatprep.subr.bf16.mxu0 %v818_v23  ;;  %v63_v23 = vmax.bf16 %v822_v24, %v31_v17 }
  0x1d   :  { %778 = vmatpush3.bf16.msra.mxu1 %v819_v20  ;;  %v657_v20 = vcombine.low %v72_v14, %v74_v15 }
  0x1e   :  { %779 = vmatprep.subr.bf16.mxu1 %v821_v37  ;;  %v650_v29 = vcombine.high %v63_v23, %v65_v25  ;;  %v649_v35 = vcombine.low %v63_v23, %v65_v25 }
  0x1f   :  { %700 = vmatpush3.bf16.msra.mxu0 %v820_v28  ;;  %v646_v28 = vcombine.low %v59_v7, %v61_v8 }
  0x21   :  { %780 = vmatpush3.bf16.msra.mxu1 %v821_v37  ;;  %v39_v37 = vld [vmem:[%s1116_s0 + $0x90] sm:$0xff] }
  0x22   :  { %439 = vmatmul.mubr.bf16.vlgmr.msra.gmra.mrb[0].mxu0 %v637_v45  ;;  %v71_v39 = vmax.bf16 %v822_v24, %v39_v37  ;;  %v75_v45 = vmax.bf16 %v822_v24, %v43_v43 }
  0x23   :  { %446 = vmatprep.mubr.bf16.mxu0 %v641_v48 }
  0x24   :  { %782 = vmatmul.mubr.bf16.vlgmr.msra.gmra.mrb[0].mxu1 %v642_v51  ;;  %v656_v42 = vcombine.high %v71_v39, %v73_v40  ;;  %v655_v47 = vcombine.low %v71_v39, %v73_v40  ;;  %v659_v48 = vcombine.high %v75_v45, %v77_v46  ;;  %v658_v49 = vcombine.low %v75_v45, %v77_v46 }
  0x25   :  { %785 = vmatprep.mubr.bf16.mxu1 %v645_v52  ;;  %v1046_v52 = vld [vmem:[%s1117_s2] ss:$0 sm:$0xff] }
  0x2a   :  { %447 = vmatmul.mubr.bf16.gmra.mrb[4].mxu0 %v640_v61 }
  0x2b   :  { %454 = vmatprep.mubr.bf16.mxu0 %v644_v0 }
  0x2c   :  { %786 = vmatmul.mubr.bf16.gmra.mrb[4].mxu1 %v648_v3 }
  0x2d   :  { %789 = vmatprep.mubr.bf16.mxu1 %v651_v4 }
  0x32   :  { %455 = vmatmul.mubr.bf16.gmra.mrb[8].mxu0 %v643_v13 }
  0x33   :  { %462 = vmatprep.mubr.bf16.mxu0 %v647_v16 }
  0x34   :  { %790 = vmatmul.mubr.bf16.gmra.mrb[8].mxu1 %v654_v19 }
  0x35   :  { %793 = vmatprep.mubr.bf16.mxu1 %v657_v20 }
  0x3a   :  { %463 = vmatmul.mubr.bf16.gmra.mrb[12].mxu0 %v646_v28 }
  0x3b   :  { %470 = vmatprep.mubr.bf16.mxu0 %v650_v29 }
  0x3c   :  { %794 = vmatmul.mubr.bf16.gmra.mrb[12].mxu1 %v660_v32 }
  0x42   :  { %471 = vmatmul.mubr.bf16.gmra.mrb[16].mxu0 %v649_v35 }
  0x43   :  { %478 = vmatprep.mubr.bf16.mxu0 %v653_v36 }
  0x4a   :  { %479 = vmatmul.mubr.bf16.gmra.mrb[20].mxu0 %v652_v41 }
  0x4b   :  { %486 = vmatprep.mubr.bf16.mxu0 %v656_v42 }
  0x52   :  { %487 = vmatmul.mubr.bf16.gmra.mrb[24].mxu0 %v655_v47 }
  0x53   :  { %494 = vmatprep.mubr.bf16.mxu0 %v659_v48 }
  0x5a   :  { %495 = vmatmul.mubr.bf16.gmra.mrb[28].mxu0 %v658_v49 }
  0xf5   :  { %v701_v50 = vpop.f32.mrb[0].mxu0 }
  0xf6   :  { %v702_v51 = vpop.f32.mrb[1].mxu0 }
  0xf7   :  { %v703_v53 = vadd.f32 %v702_v51, %v701_v50  ;;  %v704_v54 = vpop.f32.mrb[2].mxu0  ;;  %v783_v56 = vpop.f32.mrb[0].mxu1 }
  0xf8   :  { %v705_v55 = vpop.f32.mrb[3].mxu0  ;;  %v537_v58 = vpop.f32.mrb[1].mxu1 }
  0xf9   :  { %v706_v57 = vadd.f32 %v705_v55, %v704_v54  ;;  %v441_v24 = vadd.f32 %v703_v53, %v1046_v52  ;;  %v784_v59 = vpop.f32.mrb[2].mxu1 }
  0xfa   :  { %v540_v62 = vpop.f32.mrb[3].mxu1 }
  0xfb   :  { %v538_v60 = vadd.f32 %v537_v58, %v441_v24  ;;  %v444_v61 = vadd.f32 %v706_v57, %v1046_v52 }
  0xfd   :  { %v600_v63 = vmax.f32 %v538_v60, 0.0  ;;  %v541_v0 = vadd.f32 %v540_v62, %v444_v61  ;;  %v707_v1 = vpop.f32.mrb[4].mxu0 }
  0xfe   :  { %v708_v2 = vpop.f32.mrb[5].mxu0 }
  0xff   :  { %616 = vst [vmem:[%s1118_s3] sm:$0xff] %v600_v63  ;;  %v601_v3 = vmax.f32 %v541_v0, 0.0  ;;  %v709_v4 = vadd.f32 %v708_v2, %v707_v1  ;;  %v710_v5 = vpop.f32.mrb[6].mxu0  ;;  %v787_v7 = vpop.f32.mrb[4].mxu1 }
 0x100   :  { %v711_v6 = vpop.f32.mrb[7].mxu0  ;;  %v553_v10 = vpop.f32.mrb[5].mxu1 }
 0x101   :  { %617 = vst [vmem:[%s1118_s3 + $0x8] sm:$0xff] %v601_v3  ;;  %v449_v8 = vadd.f32 %v709_v4, %v1046_v52  ;;  %v712_v9 = vadd.f32 %v711_v6, %v710_v5  ;;  %v788_v11 = vpop.f32.mrb[6].mxu1 }
 0x102   :  { %v556_v14 = vpop.f32.mrb[7].mxu1 }
 0x103   :  { %v546_v12 = vadd.f32 %v783_v56, %v449_v8  ;;  %v452_v13 = vadd.f32 %v712_v9, %v1046_v52 }
 0x105   :  { %v602_v15 = vmax.f32 %v546_v12, 0.0  ;;  %v549_v16 = vadd.f32 %v784_v59, %v452_v13  ;;  %v713_v17 = vpop.f32.mrb[8].mxu0 }
 0x106   :  { %v714_v18 = vpop.f32.mrb[9].mxu0 }
 0x107   :  { %618 = vst [vmem:[%s1118_s3 + $0x10] sm:$0xff] %v602_v15  ;;  %v603_v19 = vmax.f32 %v549_v16, 0.0  ;;  %v715_v20 = vadd.f32 %v714_v18, %v713_v17  ;;  %v716_v21 = vpop.f32.mrb[10].mxu0  ;;  %v791_v23 = vpop.f32.mrb[8].mxu1 }
 0x108   :  { %v717_v22 = vpop.f32.mrb[11].mxu0  ;;  %v569_v27 = vpop.f32.mrb[9].mxu1 }
 0x109   :  { %619 = vst [vmem:[%s1118_s3 + $0x18] sm:$0xff] %v603_v19  ;;  %v718_v25 = vadd.f32 %v717_v22, %v716_v21  ;;  %v457_v26 = vadd.f32 %v715_v20, %v1046_v52  ;;  %v792_v28 = vpop.f32.mrb[10].mxu1 }
 0x10a   :  { %v572_v31 = vpop.f32.mrb[11].mxu1 }
 0x10b   :  { %v554_v29 = vadd.f32 %v553_v10, %v457_v26  ;;  %v460_v30 = vadd.f32 %v718_v25, %v1046_v52 }
 0x10d   :  { %v604_v32 = vmax.f32 %v554_v29, 0.0  ;;  %v557_v33 = vadd.f32 %v556_v14, %v460_v30  ;;  %v719_v34 = vpop.f32.mrb[12].mxu0 }
 0x10e   :  { %v720_v35 = vpop.f32.mrb[13].mxu0 }
 0x10f   :  { %620 = vst [vmem:[%s1118_s3 + $0x20] sm:$0xff] %v604_v32  ;;  %v605_v36 = vmax.f32 %v557_v33, 0.0  ;;  %v721_v37 = vadd.f32 %v720_v35, %v719_v34  ;;  %v722_v38 = vpop.f32.mrb[14].mxu0  ;;  %v1069_v40 = vpop.f32.mrb[12].mxu1 }
 0x110   :  { %v723_v39 = vpop.f32.mrb[15].mxu0  ;;  %v585_v43 = vpop.f32.mrb[13].mxu1 }
 0x111   :  { %621 = vst [vmem:[%s1118_s3 + $0x28] sm:$0xff] %v605_v36  ;;  %v465_v41 = vadd.f32 %v721_v37, %v1046_v52  ;;  %v724_v42 = vadd.f32 %v723_v39, %v722_v38  ;;  %v796_v44 = vpop.f32.mrb[14].mxu1 }
 0x112   :  { %v588_v47 = vpop.f32.mrb[15].mxu1 }
 0x113   :  { %v562_v45 = vadd.f32 %v787_v7, %v465_v41  ;;  %v468_v46 = vadd.f32 %v724_v42, %v1046_v52 }
 0x115   :  { %v606_v48 = vmax.f32 %v562_v45, 0.0  ;;  %v565_v49 = vadd.f32 %v788_v11, %v468_v46  ;;  %v725_v50 = vpop.f32.mrb[16].mxu0 }
 0x116   :  { %v726_v51 = vpop.f32.mrb[17].mxu0 }
 0x117   :  { %622 = vst [vmem:[%s1118_s3 + $0x30] sm:$0xff] %v606_v48  ;;  %v607_v53 = vmax.f32 %v565_v49, 0.0  ;;  %v727_v54 = vadd.f32 %v726_v51, %v725_v50  ;;  %v728_v55 = vpop.f32.mrb[18].mxu0 }
 0x118   :  { %v729_v56 = vpop.f32.mrb[19].mxu0 }
 0x119   :  { %623 = vst [vmem:[%s1118_s3 + $0x38] sm:$0xff] %v607_v53  ;;  %v730_v57 = vadd.f32 %v729_v56, %v728_v55  ;;  %v473_v24 = vadd.f32 %v727_v54, %v1046_v52 }
 0x11b   :  { %v570_v58 = vadd.f32 %v569_v27, %v473_v24  ;;  %v476_v59 = vadd.f32 %v730_v57, %v1046_v52 }
 0x11d   :  { %v608_v60 = vmax.f32 %v570_v58, 0.0  ;;  %v573_v61 = vadd.f32 %v572_v31, %v476_v59  ;;  %v731_v62 = vpop.f32.mrb[20].mxu0 }
 0x11e   :  { %v732_v63 = vpop.f32.mrb[21].mxu0 }
 0x11f   :  { %624 = vst [vmem:[%s1118_s3 + $0x40] sm:$0xff] %v608_v60  ;;  %v609_v0 = vmax.f32 %v573_v61, 0.0  ;;  %v733_v1 = vadd.f32 %v732_v63, %v731_v62  ;;  %v734_v2 = vpop.f32.mrb[22].mxu0 }
 0x120   :  { %v735_v3 = vpop.f32.mrb[23].mxu0 }
 0x121   :  { %625 = vst [vmem:[%s1118_s3 + $0x48] sm:$0xff] %v609_v0  ;;  %v481_v4 = vadd.f32 %v733_v1, %v1046_v52  ;;  %v736_v5 = vadd.f32 %v735_v3, %v734_v2 }
 0x123   :  { %v578_v6 = vadd.f32 %v791_v23, %v481_v4  ;;  %v484_v7 = vadd.f32 %v736_v5, %v1046_v52 }
 0x125   :  { %v610_v8 = vmax.f32 %v578_v6, 0.0  ;;  %v581_v9 = vadd.f32 %v792_v28, %v484_v7  ;;  %v737_v10 = vpop.f32.mrb[24].mxu0 }
 0x126   :  { %v738_v11 = vpop.f32.mrb[25].mxu0 }
 0x127   :  { %626 = vst [vmem:[%s1118_s3 + $0x50] sm:$0xff] %v610_v8  ;;  %v611_v12 = vmax.f32 %v581_v9, 0.0  ;;  %v739_v13 = vadd.f32 %v738_v11, %v737_v10  ;;  %v740_v14 = vpop.f32.mrb[26].mxu0 }
 0x128   :  { %v741_v15 = vpop.f32.mrb[27].mxu0 }
 0x129   :  { %627 = vst [vmem:[%s1118_s3 + $0x58] sm:$0xff] %v611_v12  ;;  %v742_v16 = vadd.f32 %v741_v15, %v740_v14  ;;  %v489_v17 = vadd.f32 %v739_v13, %v1046_v52 }
 0x12b   :  { %v586_v18 = vadd.f32 %v585_v43, %v489_v17  ;;  %v492_v19 = vadd.f32 %v742_v16, %v1046_v52 }
 0x12d   :  { %v612_v20 = vmax.f32 %v586_v18, 0.0  ;;  %v589_v21 = vadd.f32 %v588_v47, %v492_v19  ;;  %v743_v22 = vpop.f32.mrb[28].mxu0 }
 0x12e   :  { %v744_v23 = vpop.f32.mrb[29].mxu0 }
 0x12f   :  { %628 = vst [vmem:[%s1118_s3 + $0x60] sm:$0xff] %v612_v20  ;;  %v613_v25 = vmax.f32 %v589_v21, 0.0  ;;  %v745_v26 = vadd.f32 %v744_v23, %v743_v22  ;;  %v746_v27 = vpop.f32.mrb[30].mxu0 }
 0x130   :  { %v747_v28 = vpop.f32.mrb[31].mxu0 }
 0x131   :  { %629 = vst [vmem:[%s1118_s3 + $0x68] sm:$0xff] %v613_v25  ;;  %v497_v29 = vadd.f32 %v745_v26, %v1046_v52  ;;  %v748_v30 = vadd.f32 %v747_v28, %v746_v27 }
 0x133   :  { %v594_v31 = vadd.f32 %v1069_v40, %v497_v29  ;;  %v500_v32 = vadd.f32 %v748_v30, %v1046_v52 }
 0x135   :  { %v614_v33 = vmax.f32 %v594_v31, 0.0  ;;  %v597_v34 = vadd.f32 %v796_v44, %v500_v32 }
 0x137   :  { %630 = vst [vmem:[%s1118_s3 + $0x70] sm:$0xff] %v614_v33  ;;  %v615_v35 = vmax.f32 %v597_v34, 0.0 }
 0x139   :  { %631 = vst [vmem:[%s1118_s3 + $0x78] sm:$0xff] %v615_v35 }

// kernel: ccvae_forward.19
= control target key start
LH: loop header
LB: loop body
LE: loop exit
PB: predicated region body
PF: predicated region fallthrough
CT: control target
= control target key end

     0   :  { %s589_s1 = inlined_call_operand.vmem [shape: bf16[128,128], index: 1, kind: input, shape index: {}]   ;;  %s590_s0 = inlined_call_operand.vmem [shape: bf16[128,128], index: 0, kind: input, shape index: {}]   ;;  %s591_s2 = inlined_call_operand.vmem [shape: f32[1,128], index: 2, kind: input, shape index: {}]   ;;  %s592_s3 = inlined_call_operand.vmem [shape: f32[128,128], index: 3, kind: input, shape index: {}]   ;;  %s593_s4 = inlined_call_operand.vmem [shape: f32[128,128], index: 4, kind: output, shape index: {}]  }
   0x1   :  { %v383_v0 = vld [vmem:[%s589_s1] sm:$0xff]   ;;  %v384_v1 = vld [vmem:[%s589_s1 + $0x8] sm:$0xff]   ;;  %v385_v2 = vld [vmem:[%s589_s1 + $0x10] sm:$0xff]  }
   0x2   :  { %335 = vmatprep.subr.bf16.mxu0 %v383_v0  ;;  %367 = vmatprep.subr.bf16.mxu1 %v383_v0  ;;  %v386_v3 = vld [vmem:[%s589_s1 + $0x18] sm:$0xff]   ;;  %v391_v4 = vld [vmem:[%s590_s0] sm:$0xff]   ;;  %v388_v7 = vld [vmem:[%s589_s1 + $0x28] sm:$0xff]  }
   0x3   :  { %336 = vmatpush3.bf16.msra.mxu0 %v383_v0  ;;  %375 = vmatpush3.bf16.msra.mxu1 %v383_v0  ;;  %v392_v5 = vld [vmem:[%s590_s0 + $0x20] sm:$0xff]   ;;  %v389_v8 = vld [vmem:[%s589_s1 + $0x30] sm:$0xff]   ;;  %v390_v9 = vld [vmem:[%s589_s1 + $0x38] sm:$0xff]  }
   0x4   :  { %337 = vmatprep.subr.bf16.mxu0 %v384_v1  ;;  %368 = vmatprep.subr.bf16.mxu1 %v384_v1  ;;  %v387_v6 = vld [vmem:[%s589_s1 + $0x20] sm:$0xff]   ;;  %v393_v10 = vld [vmem:[%s590_s0 + $0x8] sm:$0xff]   ;;  %v395_v12 = vld [vmem:[%s590_s0 + $0x10] sm:$0xff]  }
   0x5   :  { %351 = vmatprep.mubr.bf16.mxu0 %v391_v4  ;;  %359 = vmatprep.mubr.bf16.mxu1 %v392_v5  ;;  %v394_v11 = vld [vmem:[%s590_s0 + $0x28] sm:$0xff]   ;;  %v396_v13 = vld [vmem:[%s590_s0 + $0x30] sm:$0xff]   ;;  %v397_v14 = vld [vmem:[%s590_s0 + $0x18] sm:$0xff]  }
   0x6   :  { %v398_v15 = vld [vmem:[%s590_s0 + $0x38] sm:$0xff]   ;;  %v475_v16 = vld [vmem:[%s591_s2] ss:$0 sm:$0xff]  ;;  %v252_v18 = vld [vmem:[%s592_s3 + $0x10] sm:$0xff] }
   0x7   :  { %338 = vmatpush3.bf16.msra.mxu0 %v384_v1  ;;  %376 = vmatpush3.bf16.msra.mxu1 %v384_v1  ;;  %v260_v20 = vld [vmem:[%s592_s3 + $0x50] sm:$0xff]  ;;  %v250_v24 = vld [vmem:[%s592_s3] sm:$0xff]  ;;  %v253_v30 = vld [vmem:[%s592_s3 + $0x18] sm:$0xff] }
   0x8   :  { %339 = vmatprep.subr.bf16.mxu0 %v385_v2  ;;  %369 = vmatprep.subr.bf16.mxu1 %v385_v2  ;;  %v258_v26 = vld [vmem:[%s592_s3 + $0x40] sm:$0xff]  ;;  %v261_v32 = vld [vmem:[%s592_s3 + $0x58] sm:$0xff]  ;;  %v251_v38 = vld [vmem:[%s592_s3 + $0x8] sm:$0xff] }
   0x9   :  { %v259_v40 = vld [vmem:[%s592_s3 + $0x48] sm:$0xff]  ;;  %v256_v50 = vld [vmem:[%s592_s3 + $0x30] sm:$0xff]  ;;  %v254_v56 = vld [vmem:[%s592_s3 + $0x20] sm:$0xff] }
   0xa   :  { %v264_v52 = vld [vmem:[%s592_s3 + $0x70] sm:$0xff]  ;;  %v262_v58 = vld [vmem:[%s592_s3 + $0x60] sm:$0xff]  ;;  %v257_v62 = vld [vmem:[%s592_s3 + $0x38] sm:$0xff] }
   0xb   :  { %340 = vmatpush3.bf16.msra.mxu0 %v385_v2  ;;  %377 = vmatpush3.bf16.msra.mxu1 %v385_v2  ;;  %v265_v0 = vld [vmem:[%s592_s3 + $0x78] sm:$0xff] }
   0xc   :  { %341 = vmatprep.subr.bf16.mxu0 %v386_v3  ;;  %370 = vmatprep.subr.bf16.mxu1 %v386_v3 }
   0xf   :  { %342 = vmatpush3.bf16.msra.mxu0 %v386_v3  ;;  %378 = vmatpush3.bf16.msra.mxu1 %v386_v3 }
  0x10   :  { %343 = vmatprep.subr.bf16.mxu0 %v387_v6  ;;  %371 = vmatprep.subr.bf16.mxu1 %v387_v6 }
  0x13   :  { %344 = vmatpush3.bf16.msra.mxu0 %v387_v6  ;;  %379 = vmatpush3.bf16.msra.mxu1 %v387_v6  ;;  %v255_v6 = vld [vmem:[%s592_s3 + $0x28] sm:$0xff] }
  0x14   :  { %345 = vmatprep.subr.bf16.mxu0 %v388_v7  ;;  %372 = vmatprep.subr.bf16.mxu1 %v388_v7 }
  0x17   :  { %346 = vmatpush3.bf16.msra.mxu0 %v388_v7  ;;  %380 = vmatpush3.bf16.msra.mxu1 %v388_v7 }
  0x18   :  { %347 = vmatprep.subr.bf16.mxu0 %v389_v8  ;;  %373 = vmatprep.subr.bf16.mxu1 %v389_v8 }
  0x1b   :  { %348 = vmatpush3.bf16.msra.mxu0 %v389_v8  ;;  %381 = vmatpush3.bf16.msra.mxu1 %v389_v8  ;;  %v263_v8 = vld [vmem:[%s592_s3 + $0x68] sm:$0xff] }
  0x1c   :  { %349 = vmatprep.subr.bf16.mxu0 %v390_v9  ;;  %374 = vmatprep.subr.bf16.mxu1 %v390_v9 }
  0x1f   :  { %350 = vmatpush3.bf16.msra.mxu0 %v390_v9  ;;  %382 = vmatpush3.bf16.msra.mxu1 %v390_v9 }
  0x22   :  { %352 = vmatmul.mubr.bf16.vlgmr.msra.gmra.mrb[0].mxu0 %v393_v10  ;;  %360 = vmatmul.mubr.bf16.vlgmr.msra.gmra.mrb[0].mxu1 %v394_v11 }
  0x23   :  { %355 = vmatprep.mubr.bf16.mxu0 %v395_v12  ;;  %363 = vmatprep.mubr.bf16.mxu1 %v396_v13 }
  0x2a   :  { %356 = vmatmul.mubr.bf16.gmra.mrb[4].mxu0 %v397_v14  ;;  %364 = vmatmul.mubr.bf16.gmra.mrb[4].mxu1 %v398_v15 }
  0xf5   :  { %v353_v17 = vpop.f32.mrb[0].mxu0  ;;  %v361_v19 = vpop.f32.mrb[0].mxu1 }
  0xf6   :  { %v196_v21 = vadd.f32 %v353_v17, %v475_v16  ;;  %v228_v22 = vadd.f32 %v361_v19, %v475_v16  ;;  %v187_v23 = vpop.f32.mrb[1].mxu0  ;;  %v219_v25 = vpop.f32.mrb[1].mxu1 }
  0xf7   :  { %v188_v27 = vadd.f32 %v475_v16, %v187_v23  ;;  %v220_v28 = vadd.f32 %v475_v16, %v219_v25  ;;  %v354_v29 = vpop.f32.mrb[2].mxu0  ;;  %v362_v31 = vpop.f32.mrb[2].mxu1 }
  0xf8   :  { %v268_v33 = vadd.f32 %v252_v18, %v196_v21  ;;  %v276_v34 = vadd.f32 %v260_v20, %v228_v22  ;;  %v199_v35 = vadd.f32 %v354_v29, %v475_v16  ;;  %v231_v36 = vadd.f32 %v362_v31, %v475_v16  ;;  %v190_v37 = vpop.f32.mrb[3].mxu0  ;;  %v222_v39 = vpop.f32.mrb[3].mxu1 }
  0xf9   :  { %v266_v41 = vadd.f32 %v250_v24, %v188_v27  ;;  %v274_v42 = vadd.f32 %v258_v26, %v220_v28  ;;  %v191_v43 = vadd.f32 %v475_v16, %v190_v37  ;;  %v223_v44 = vadd.f32 %v475_v16, %v222_v39 }
  0xfa   :  { %284 = vst [vmem:[%s593_s4 + $0x10] sm:$0xff] %v268_v33  ;;  %292 = vst [vmem:[%s593_s4 + $0x50] sm:$0xff] %v276_v34  ;;  %v269_v45 = vadd.f32 %v253_v30, %v199_v35  ;;  %v277_v46 = vadd.f32 %v261_v32, %v231_v36 }
  0xfb   :  { %282 = vst [vmem:[%s593_s4] sm:$0xff] %v266_v41  ;;  %290 = vst [vmem:[%s593_s4 + $0x40] sm:$0xff] %v274_v42  ;;  %v267_v47 = vadd.f32 %v251_v38, %v191_v43  ;;  %v275_v48 = vadd.f32 %v259_v40, %v223_v44 }
  0xfc   :  { %285 = vst [vmem:[%s593_s4 + $0x18] sm:$0xff] %v269_v45  ;;  %293 = vst [vmem:[%s593_s4 + $0x58] sm:$0xff] %v277_v46 }
  0xfd   :  { %283 = vst [vmem:[%s593_s4 + $0x8] sm:$0xff] %v267_v47  ;;  %291 = vst [vmem:[%s593_s4 + $0x48] sm:$0xff] %v275_v48  ;;  %v357_v49 = vpop.f32.mrb[4].mxu0  ;;  %v365_v51 = vpop.f32.mrb[4].mxu1 }
  0xfe   :  { %v212_v53 = vadd.f32 %v357_v49, %v475_v16  ;;  %v244_v54 = vadd.f32 %v365_v51, %v475_v16  ;;  %v203_v55 = vpop.f32.mrb[5].mxu0  ;;  %v235_v57 = vpop.f32.mrb[5].mxu1 }
  0xff   :  { %v204_v59 = vadd.f32 %v475_v16, %v203_v55  ;;  %v236_v60 = vadd.f32 %v475_v16, %v235_v57  ;;  %v358_v61 = vpop.f32.mrb[6].mxu0  ;;  %v366_v63 = vpop.f32.mrb[6].mxu1 }
 0x100   :  { %v272_v1 = vadd.f32 %v256_v50, %v212_v53  ;;  %v280_v2 = vadd.f32 %v264_v52, %v244_v54  ;;  %v215_v3 = vadd.f32 %v358_v61, %v475_v16  ;;  %v247_v4 = vadd.f32 %v366_v63, %v475_v16  ;;  %v206_v5 = vpop.f32.mrb[7].mxu0  ;;  %v238_v7 = vpop.f32.mrb[7].mxu1 }
 0x101   :  { %v270_v9 = vadd.f32 %v254_v56, %v204_v59  ;;  %v278_v10 = vadd.f32 %v262_v58, %v236_v60  ;;  %v207_v11 = vadd.f32 %v475_v16, %v206_v5  ;;  %v239_v12 = vadd.f32 %v475_v16, %v238_v7 }
 0x102   :  { %288 = vst [vmem:[%s593_s4 + $0x30] sm:$0xff] %v272_v1  ;;  %296 = vst [vmem:[%s593_s4 + $0x70] sm:$0xff] %v280_v2  ;;  %v273_v13 = vadd.f32 %v257_v62, %v215_v3  ;;  %v281_v14 = vadd.f32 %v265_v0, %v247_v4 }
 0x103   :  { %286 = vst [vmem:[%s593_s4 + $0x20] sm:$0xff] %v270_v9  ;;  %294 = vst [vmem:[%s593_s4 + $0x60] sm:$0xff] %v278_v10  ;;  %v271_v15 = vadd.f32 %v255_v6, %v207_v11  ;;  %v279_v16 = vadd.f32 %v263_v8, %v239_v12 }
 0x104   :  { %289 = vst [vmem:[%s593_s4 + $0x38] sm:$0xff] %v273_v13  ;;  %297 = vst [vmem:[%s593_s4 + $0x78] sm:$0xff] %v281_v14 }
 0x105   :  { %287 = vst [vmem:[%s593_s4 + $0x28] sm:$0xff] %v271_v15  ;;  %295 = vst [vmem:[%s593_s4 + $0x68] sm:$0xff] %v279_v16 }

// kernel: ccvae_forward.29
= control target key start
LH: loop header
LB: loop body
LE: loop exit
PB: predicated region body
PF: predicated region fallthrough
CT: control target
= control target key end

     0   :  { %s633_s12 = smov 0   ;;  %s733_s0 = inlined_call_operand.vmem [shape: bf16[256,128], index: 0, kind: input, shape index: {}]   ;;  %s734_s1 = inlined_call_operand.vmem [shape: bf16[128,128], index: 1, kind: input, shape index: {}]   ;;  %s735_s2 = inlined_call_operand.vmem [shape: f32[1,128], index: 2, kind: input, shape index: {}]   ;;  %s736_s3 = inlined_call_operand.vmem [shape: f32[256,128], index: 3, kind: output, shape index: {}]  }
   0x1 LB: > { %s495_s13 = sadd.s32 4294967295, %s610_s12   ;;  %p499_p0 = scmp.ge.s32.totalorder %s610_s12, 1  ;;  %s610_s12 = sphi %s633_s12, %s13_s12  }
   0x2   : > { %p138_p1 = scmp.lt.s32.totalorder %s610_s12, 3 }
   0x4   : > { %p139_p2 = pnand %p499_p0, %p138_p1 }
   0x5   : > { %v596_v0 = vld [vmem:[%s734_s1] sm:$0xff] (!%p139_p2)   ;;  %s500_s16 = sshll.u32 (!%p139_p2), %s495_s13, 4  ;;  %v597_v1 = vld [vmem:[%s734_s1 + $0x8] sm:$0xff] (!%p139_p2)   ;;  %v598_v2 = vld [vmem:[%s734_s1 + $0x10] sm:$0xff] (!%p139_p2)   ;;  %v612_v7 = vmov (!%p139_p2), 0  }
   0x6   : > { %142 = sbr.rel (%p139_p2) target bundleno = 264 (0x108), region = 32  ;;  %p163_p3 = scmp.lt.s32.totalorder (!%p139_p2), %s500_s16, 31  ;;  %539 = vmatprep.subr.bf16.mxu0 (!%p139_p2), %v596_v0  ;;  %571 = vmatprep.subr.bf16.mxu1 (!%p139_p2), %v596_v0  ;;  %v599_v3 = vld [vmem:[%s734_s1 + $0x18] sm:$0xff] (!%p139_p2)   ;;  %v600_v14 = vld [vmem:[%s734_s1 + $0x20] sm:$0xff] (!%p139_p2)   ;;  %v601_v16 = vld [vmem:[%s734_s1 + $0x28] sm:$0xff] (!%p139_p2)  }
   0x7   : > { %540 = vmatpush3.bf16.msra.mxu0 (!%p139_p2), %v596_v0  ;;  %579 = vmatpush3.bf16.msra.mxu1 (!%p139_p2), %v596_v0  ;;  %v602_v17 = vld [vmem:[%s734_s1 + $0x30] sm:$0xff] (!%p139_p2)   ;;  %v603_v18 = vld [vmem:[%s734_s1 + $0x38] sm:$0xff] (!%p139_p2)   ;;  %v504_v49 = vld [vmem:[%s735_s2] ss:$0 sm:$0xff] (!%p139_p2) }
   0x8   : > { %541 = vmatprep.subr.bf16.mxu0 (!%p139_p2), %v597_v1  ;;  %572 = vmatprep.subr.bf16.mxu1 (!%p139_p2), %v597_v1 }
   0xb   : > { %542 = vmatpush3.bf16.msra.mxu0 (!%p139_p2), %v597_v1  ;;  %580 = vmatpush3.bf16.msra.mxu1 (!%p139_p2), %v597_v1 }
   0xc   : > { %543 = vmatprep.subr.bf16.mxu0 (!%p139_p2), %v598_v2  ;;  %573 = vmatprep.subr.bf16.mxu1 (!%p139_p2), %v598_v2 }
   0xd   : > { %s738_s16 = smov (!%p163_p3, %s500_s16), 31 }
   0xe   : > { %s501_s21 = sshll.u32 %s738_s16, 2  ;;  %s503_s8 = sshll.u32 %s738_s16, 3 }
   0xf   : > { %s656_s24 = scalar_lea.vmem %s733_s0, %s501_s21  ;;  %544 = vmatpush3.bf16.msra.mxu0 %v598_v2  ;;  %581 = vmatpush3.bf16.msra.mxu1 %v598_v2  ;;  %s712_s14 = scalar_lea.vmem %s736_s3, %s503_s8 }
  0x10   : > { %v175_v4 = vld [vmem:[%s656_s24] sm:$0xf]  ;;  %v176_v5 = vld [vmem:[%s656_s24 + $0x4] sm:$0xf]  ;;  %545 = vmatprep.subr.bf16.mxu0 %v599_v3  ;;  %574 = vmatprep.subr.bf16.mxu1 %v599_v3  ;;  %v177_v19 = vld [vmem:[%s656_s24 + $0x8] sm:$0xf] }
  0x11   : > { %v183_v6 = vld [vmem:[%s656_s24 + $0x20] sm:$0xf]  ;;  %v191_v8 = vmax.bf16 %v612_v7, %v175_v4  ;;  %v192_v9 = vmax.bf16 %v612_v7, %v176_v5  ;;  %v184_v10 = vld [vmem:[%s656_s24 + $0x24] sm:$0xf]  ;;  %v178_v20 = vld [vmem:[%s656_s24 + $0xc] sm:$0xf]  ;;  %v193_v27 = vmax.bf16 %v612_v7, %v177_v19 }
  0x12   : > { %v199_v11 = vmax.bf16 %v612_v7, %v183_v6  ;;  %v200_v12 = vmax.bf16 %v612_v7, %v184_v10  ;;  %v185_v21 = vld [vmem:[%s656_s24 + $0x28] sm:$0xf]  ;;  %v186_v22 = vld [vmem:[%s656_s24 + $0x2c] sm:$0xf]  ;;  %v179_v23 = vld [vmem:[%s656_s24 + $0x10] sm:$0xf]  ;;  %v194_v28 = vmax.bf16 %v612_v7, %v178_v20 }
  0x13   : > { %v505_v13 = vcombine.low %v191_v8, %v192_v9  ;;  %546 = vmatpush3.bf16.msra.mxu0 %v599_v3  ;;  %582 = vmatpush3.bf16.msra.mxu1 %v599_v3  ;;  %v180_v24 = vld [vmem:[%s656_s24 + $0x14] sm:$0xf]  ;;  %v187_v25 = vld [vmem:[%s656_s24 + $0x30] sm:$0xf]  ;;  %v201_v29 = vmax.bf16 %v612_v7, %v185_v21  ;;  %v202_v30 = vmax.bf16 %v612_v7, %v186_v22  ;;  %v181_v37 = vld [vmem:[%s656_s24 + $0x18] sm:$0xf] }
  0x14   : > { %v509_v15 = vcombine.low %v199_v11, %v200_v12  ;;  %547 = vmatprep.subr.bf16.mxu0 %v600_v14  ;;  %575 = vmatprep.subr.bf16.mxu1 %v600_v14  ;;  %v188_v26 = vld [vmem:[%s656_s24 + $0x34] sm:$0xf]  ;;  %v195_v31 = vmax.bf16 %v612_v7, %v179_v23  ;;  %v196_v32 = vmax.bf16 %v612_v7, %v180_v24  ;;  %v182_v40 = vld [vmem:[%s656_s24 + $0x1c] sm:$0xf]  ;;  %v189_v41 = vld [vmem:[%s656_s24 + $0x38] sm:$0xf] }
  0x15   : > { %555 = vmatprep.mubr.bf16.mxu0 %v505_v13  ;;  %v203_v33 = vmax.bf16 %v612_v7, %v187_v25  ;;  %v204_v34 = vmax.bf16 %v612_v7, %v188_v26  ;;  %v506_v35 = vcombine.low %v193_v27, %v194_v28  ;;  %v510_v36 = vcombine.low %v201_v29, %v202_v30  ;;  %v190_v42 = vld [vmem:[%s656_s24 + $0x3c] sm:$0xf] }
  0x16   : > { %563 = vmatprep.mubr.bf16.mxu1 %v509_v15  ;;  %v507_v38 = vcombine.low %v195_v31, %v196_v32  ;;  %v197_v43 = vmax.bf16 %v612_v7, %v181_v37  ;;  %v198_v44 = vmax.bf16 %v612_v7, %v182_v40  ;;  %v205_v45 = vmax.bf16 %v612_v7, %v189_v41 }
  0x17   : > { %548 = vmatpush3.bf16.msra.mxu0 %v600_v14  ;;  %583 = vmatpush3.bf16.msra.mxu1 %v600_v14  ;;  %v511_v39 = vcombine.low %v203_v33, %v204_v34  ;;  %v206_v46 = vmax.bf16 %v612_v7, %v190_v42 }
  0x18   : > { %549 = vmatprep.subr.bf16.mxu0 %v601_v16  ;;  %576 = vmatprep.subr.bf16.mxu1 %v601_v16  ;;  %v508_v47 = vcombine.low %v197_v43, %v198_v44 }
  0x19   : > { %v512_v48 = vcombine.low %v205_v45, %v206_v46 }
  0x1b   : > { %550 = vmatpush3.bf16.msra.mxu0 %v601_v16  ;;  %584 = vmatpush3.bf16.msra.mxu1 %v601_v16 }
  0x1c   : > { %551 = vmatprep.subr.bf16.mxu0 %v602_v17  ;;  %577 = vmatprep.subr.bf16.mxu1 %v602_v17 }
  0x1f   : > { %552 = vmatpush3.bf16.msra.mxu0 %v602_v17  ;;  %585 = vmatpush3.bf16.msra.mxu1 %v602_v17 }
  0x20   : > { %553 = vmatprep.subr.bf16.mxu0 %v603_v18  ;;  %578 = vmatprep.subr.bf16.mxu1 %v603_v18 }
  0x23   : > { %554 = vmatpush3.bf16.msra.mxu0 %v603_v18  ;;  %586 = vmatpush3.bf16.msra.mxu1 %v603_v18 }
  0x26   : > { %556 = vmatmul.mubr.bf16.vlgmr.msra.gmra.mrb[0].mxu0 %v506_v35  ;;  %564 = vmatmul.mubr.bf16.vlgmr.msra.gmra.mrb[0].mxu1 %v510_v36 }
  0x27   : > { %559 = vmatprep.mubr.bf16.mxu0 %v507_v38  ;;  %567 = vmatprep.mubr.bf16.mxu1 %v511_v39 }
  0x2e   : > { %560 = vmatmul.mubr.bf16.gmra.mrb[4].mxu0 %v508_v47  ;;  %568 = vmatmul.mubr.bf16.gmra.mrb[4].mxu1 %v512_v48 }
  0xf9   : > { %v557_v50 = vpop.f32.mrb[0].mxu0  ;;  %v565_v51 = vpop.f32.mrb[0].mxu1 }
  0xfa   : > { %v369_v52 = vadd.f32 %v557_v50, %v504_v49  ;;  %v401_v53 = vadd.f32 %v565_v51, %v504_v49  ;;  %v360_v54 = vpop.f32.mrb[1].mxu0  ;;  %v392_v55 = vpop.f32.mrb[1].mxu1 }
  0xfb   : > { %v361_v56 = vadd.f32 %v504_v49, %v360_v54  ;;  %v393_v57 = vadd.f32 %v504_v49, %v392_v55  ;;  %v558_v58 = vpop.f32.mrb[2].mxu0  ;;  %v566_v59 = vpop.f32.mrb[2].mxu1 }
  0xfc   : > { %425 = vst [vmem:[%s712_s14 + $0x10] sm:$0xff] %v369_v52  ;;  %433 = vst [vmem:[%s712_s14 + $0x50] sm:$0xff] %v401_v53  ;;  %v372_v60 = vadd.f32 %v558_v58, %v504_v49  ;;  %v404_v61 = vadd.f32 %v566_v59, %v504_v49  ;;  %v363_v62 = vpop.f32.mrb[3].mxu0  ;;  %v395_v63 = vpop.f32.mrb[3].mxu1 }
  0xfd   : > { %423 = vst [vmem:[%s712_s14] sm:$0xff] %v361_v56  ;;  %431 = vst [vmem:[%s712_s14 + $0x40] sm:$0xff] %v393_v57  ;;  %v364_v0 = vadd.f32 %v504_v49, %v363_v62  ;;  %v396_v1 = vadd.f32 %v504_v49, %v395_v63 }
  0xfe   : > { %426 = vst [vmem:[%s712_s14 + $0x18] sm:$0xff] %v372_v60  ;;  %434 = vst [vmem:[%s712_s14 + $0x58] sm:$0xff] %v404_v61 }
  0xff   : > { %424 = vst [vmem:[%s712_s14 + $0x8] sm:$0xff] %v364_v0  ;;  %432 = vst [vmem:[%s712_s14 + $0x48] sm:$0xff] %v396_v1 }
 0x101   : > { %v561_v2 = vpop.f32.mrb[4].mxu0  ;;  %v569_v3 = vpop.f32.mrb[4].mxu1 }
 0x102   : > { %v385_v4 = vadd.f32 %v561_v2, %v504_v49  ;;  %v417_v5 = vadd.f32 %v569_v3, %v504_v49  ;;  %v376_v6 = vpop.f32.mrb[5].mxu0  ;;  %v408_v7 = vpop.f32.mrb[5].mxu1 }
 0x103   : > { %v377_v8 = vadd.f32 %v504_v49, %v376_v6  ;;  %v409_v9 = vadd.f32 %v504_v49, %v408_v7  ;;  %v562_v10 = vpop.f32.mrb[6].mxu0  ;;  %v570_v11 = vpop.f32.mrb[6].mxu1 }
 0x104   : > { %429 = vst [vmem:[%s712_s14 + $0x30] sm:$0xff] %v385_v4  ;;  %437 = vst [vmem:[%s712_s14 + $0x70] sm:$0xff] %v417_v5  ;;  %v388_v12 = vadd.f32 %v562_v10, %v504_v49  ;;  %v420_v13 = vadd.f32 %v570_v11, %v504_v49  ;;  %v379_v14 = vpop.f32.mrb[7].mxu0  ;;  %v411_v15 = vpop.f32.mrb[7].mxu1 }
 0x105   : > { %427 = vst [vmem:[%s712_s14 + $0x20] sm:$0xff] %v377_v8  ;;  %435 = vst [vmem:[%s712_s14 + $0x60] sm:$0xff] %v409_v9  ;;  %v380_v16 = vadd.f32 %v504_v49, %v379_v14  ;;  %v412_v17 = vadd.f32 %v504_v49, %v411_v15 }
 0x106   : > { %430 = vst [vmem:[%s712_s14 + $0x38] sm:$0xff] %v388_v12  ;;  %438 = vst [vmem:[%s712_s14 + $0x78] sm:$0xff] %v420_v13 }
 0x107   : > { %428 = vst [vmem:[%s712_s14 + $0x28] sm:$0xff] %v380_v16  ;;  %436 = vst [vmem:[%s712_s14 + $0x68] sm:$0xff] %v412_v17 }
 0x108 PF: > { %s13_s12 = sadd.s32 1, %s610_s12  }
 0x109   : > { %p10_p4 = scmp.ge.s32.totalorder %s13_s12, 4  }
 0x10b   :  { %12 = sbr.rel (!%p10_p4) target bundleno = 1 (0x1), region = 62 }

</bundles_post_ra>
